<compile_context>
chip_gen: v7x
topology: tpu7x:2x2x1
jax: 0.10.0
libtpu: 0.0.40
codegen_flags: <defaults>
</compile_context>

<pallas_src>
import jax
import jax.numpy as jnp
from jax import lax
from jax.experimental import pallas as pl
from jax.experimental.pallas import tpu as pltpu

_EPS = 1e-5


def _round_up(n, m):
    return (n + m - 1) // m * m


# ---------------------------------------------------------------------------
# Fused kernel (one grid step == one TCN block of one batch sample)
# ---------------------------------------------------------------------------
def _make_fused_kernel(*, C, Cres_pad, H, T, NB):
    inv_c = 1.0 / C
    inv_ht = 1.0 / (H * T)

    def kernel(x_ref, mem_ref, rbias_ref, dil_ref, slopes_ref,
               ln1g_ref, ln1b_ref, c1w_ref, c1b_ref,
               w1y_ref, b1_ref, g1_ref, be1_ref,
               wd_ref, bd_ref, g2_ref, be2_ref, w2_ref, b2_ref,
               m1w_ref, m1b_ref,
               encs_ref, newmem_ref,
               y_buf):
        blk = pl.program_id(1)

        # ---------------- prologue: channel-LN + conv1, run once per sample ----
        @pl.when(blk == 0)
        def _():
            x = x_ref[0]                                           # (C, T)
            mean = jnp.sum(x, axis=0, keepdims=True) * inv_c
            var = jnp.maximum(
                jnp.sum(x * x, axis=0, keepdims=True) * inv_c - mean * mean, 0.0)
            xn = (x - mean) * lax.rsqrt(var + _EPS)
            xn = xn * ln1g_ref[...] + ln1b_ref[...]
            y0 = jnp.dot(c1w_ref[...], xn.astype(jnp.bfloat16),
                         preferred_element_type=jnp.float32) + c1b_ref[...]
            y_buf[:C, :] = y0
            y_buf[C:, :] = mem_ref[0]        # memory rows; zero-padded rows stay 0

        # ---------------- TCN block (every grid step) --------------------------
        yb = y_buf[...]                                            # (Cres_pad, T) f32

        # 1x1 bottleneck conv (bf16 MXU) + per-stack speaker-embedding bias
        # (rbias is zero for non-first blocks, so no branch is needed).
        h = jnp.dot(w1y_ref[0], yb.astype(jnp.bfloat16),
                    preferred_element_type=jnp.float32) + b1_ref[0]
        h = h + rbias_ref[0, 0]

        # PReLU (shared slope, scalar from SMEM)
        a1 = slopes_ref[blk, 0]
        h = jnp.where(h > 0, h, a1 * h)

        # global LayerNorm over (H, T), one-pass stats with clamp
        m = jnp.sum(h) * inv_ht
        v = jnp.maximum(jnp.sum(h * h) * inv_ht - m * m, 0.0)
        h = (h - m) * lax.rsqrt(v + _EPS) * g1_ref[0] + be1_ref[0]

        # depthwise dilated conv, k=3, 'same' zero padding (dilation from SMEM)
        d = dil_ref[blk, 0]                                        # int32 scalar
        lane = lax.broadcasted_iota(jnp.int32, (1, T), 1)
        h_prev = jnp.where(lane >= d, pltpu.roll(h, d, axis=1), 0.0)       # h[t-d]
        h_next = jnp.where(lane < T - d, pltpu.roll(h, T - d, axis=1), 0.0)  # h[t+d]
        wd = wd_ref[0]                                             # (H, 3)
        h = wd[:, 0:1] * h_prev + wd[:, 1:2] * h + wd[:, 2:3] * h_next + bd_ref[0]

        # PReLU
        a2 = slopes_ref[blk, 1]
        h = jnp.where(h > 0, h, a2 * h)

        # global LayerNorm
        m = jnp.sum(h) * inv_ht
        v = jnp.maximum(jnp.sum(h * h) * inv_ht - m * m, 0.0)
        h = (h - m) * lax.rsqrt(v + _EPS) * g2_ref[0] + be2_ref[0]

        # 1x1 conv back to residual width + skip connection
        out = jnp.dot(w2_ref[0], h.astype(jnp.bfloat16),
                      preferred_element_type=jnp.float32) + b2_ref[0]
        y_buf[...] = yb + out

        # ---------------- epilogue: mask head, run once per sample -------------
        @pl.when(blk == NB - 1)
        def _():
            y_fin = y_buf[:C, :]
            mask = jnp.dot(m1w_ref[...], y_fin.astype(jnp.bfloat16),
                           preferred_element_type=jnp.float32) + m1b_ref[...]
            mask = jnp.maximum(mask, 0.0)
            encs_ref[0] = (x_ref[0] * mask).astype(encs_ref.dtype)
            newmem_ref[0] = y_buf[C:, :].astype(newmem_ref.dtype)   # padded sp rows

    return kernel


# ---------------------------------------------------------------------------
# BlockSpec helpers
# ---------------------------------------------------------------------------
def _const_spec(arr):
    nd = arr.ndim
    return pl.BlockSpec(arr.shape, lambda b, k, _nd=nd: (0,) * _nd)


def _blk_spec(arr):
    nd = arr.ndim
    return pl.BlockSpec((1,) + arr.shape[1:],
                        lambda b, k, _nd=nd: (k,) + (0,) * (_nd - 1))


# ---------------------------------------------------------------------------
# Wrapper
# ---------------------------------------------------------------------------
def speaker_extractor_forward(params, x, ref, memory=None):
    B, C, T = x.shape
    n_sp = params["n_sp_channels"]
    Cres_pad = params["Cres_pad"]
    H = params["hidden"]
    NS = params["n_stacks"]
    NJ = params["n_tcnblocks"]
    NB = NS * NJ
    sp_pad = Cres_pad - C

    if memory is None:
        mem = jnp.zeros((B, sp_pad, T), dtype=x.dtype)
    else:
        mem = jnp.pad(memory.astype(x.dtype), ((0, 0), (0, sp_pad - n_sp), (0, 0)))

    # Speaker-embedding contribution of each stack's first 1x1 conv, hoisted off
    # the serial in-kernel path. Expanded to one (H,1) column per block (zero for
    # non-first blocks) so the kernel just adds it unconditionally.
    rbias = jnp.einsum("shr,br->bsh", params["W1R"], ref.astype(jnp.float32))  # (B,NS,H)
    rbias_full = jnp.zeros((B, NB, H), jnp.float32).at[:, ::NJ, :].set(rbias)
    rbias_full = rbias_full[..., None]                                          # (B,NB,H,1)

    kernel = _make_fused_kernel(C=C, Cres_pad=Cres_pad, H=H, T=T, NB=NB)

    const_w = (params["ln1_g"], params["ln1_b"], params["conv1_w"], params["conv1_b"])
    blk_w = (params["W1Y"], params["B1"], params["G1"], params["BE1"],
             params["WD"], params["BD"], params["G2"], params["BE2"],
             params["W2"], params["B2"])
    head_w = (params["mask1_w"], params["mask1_b"])

    in_specs = (
        [pl.BlockSpec((1, C, T), lambda b, k: (b, 0, 0)),            # x
         pl.BlockSpec((1, sp_pad, T), lambda b, k: (b, 0, 0)),       # memory (padded)
         pl.BlockSpec((1, 1, H, 1), lambda b, k: (b, k, 0, 0)),      # ref bias per block
         pl.BlockSpec(memory_space=pltpu.MemorySpace.SMEM),          # dilations
         pl.BlockSpec(memory_space=pltpu.MemorySpace.SMEM)]          # PReLU slopes
        + [_const_spec(w) for w in const_w]
        + [_blk_spec(w) for w in blk_w]
        + [_const_spec(w) for w in head_w])

    out_specs = [pl.BlockSpec((1, C, T), lambda b, k: (b, 0, 0)),
                 pl.BlockSpec((1, sp_pad, T), lambda b, k: (b, 0, 0))]

    encs1, new_mem_pad = pl.pallas_call(
        kernel,
        out_shape=(jax.ShapeDtypeStruct((B, C, T), x.dtype),
                   jax.ShapeDtypeStruct((B, sp_pad, T), x.dtype)),
        grid=(B, NB),
        in_specs=in_specs,
        out_specs=out_specs,
        scratch_shapes=[pltpu.VMEM((Cres_pad, T), jnp.float32)],
        compiler_params=pltpu.CompilerParams(
            dimension_semantics=("parallel", "arbitrary")),
    )(x, mem, rbias_full, params["dilations"], params["slopes"],
      *const_w, *blk_w, *head_w)

    return encs1, new_mem_pad[:, :n_sp, :]


# ---------------------------------------------------------------------------
# Parameters (deterministic synthetic init, packed for the fused kernel)
# ---------------------------------------------------------------------------
def init_params(key, n_channels, hidden_channels, out_channels,
                n_stacked_tcnblocks, n_tcnblocks, n_sp_channels):
    """Synthetic params, pre-stacked per block and zero-padded to 8-aligned
    channel counts so every matmul operand is whole-tile aligned.  Matmul
    weights are stored bf16 (MXU native); biases/LN params stay f32.

    w1 of the first (ref) block of each stack is stored split:
      W1Y[blk] acts on the running (Cres) activation, W1R[stack] on the
      speaker embedding (applied in the wrapper).  Padded rows/cols are zero.
    """
    C, H, R = n_channels, hidden_channels, out_channels
    Cres = C + n_sp_channels
    Cres_pad = _round_up(Cres, 8)
    NS, NJ = n_stacked_tcnblocks, n_tcnblocks
    NB = NS * NJ

    keys = iter(jax.random.split(key, 64))

    def nrm(shape, scale=0.1):
        return (scale * jax.random.normal(next(keys), shape)).astype(jnp.float32)

    def pad_axis(a, axis, n):
        pads = [(0, 0)] * a.ndim
        pads[axis] = (0, n - a.shape[axis])
        return jnp.pad(a, pads)

    dil = jnp.tile(jnp.array([2 ** j for j in range(NJ)], jnp.int32), NS)

    return {
        "n_sp_channels": n_sp_channels,
        "Cres_pad": Cres_pad,
        "hidden": H,
        "n_stacks": NS,
        "n_tcnblocks": NJ,
        "ln1_g": jnp.ones((C, 1), jnp.float32),
        "ln1_b": jnp.zeros((C, 1), jnp.float32),
        "conv1_w": nrm((C, C)).astype(jnp.bfloat16),
        "conv1_b": nrm((C, 1)),
        "mask1_w": nrm((C, C)).astype(jnp.bfloat16),
        "mask1_b": nrm((C, 1)),
        "W1Y": pad_axis(nrm((NB, H, Cres)), 2, Cres_pad).astype(jnp.bfloat16),
        "W1R": nrm((NS, H, R)),                              # ref part (block 0 of stack)
        "B1": nrm((NB, H, 1)),
        "G1": jnp.ones((NB, H, 1), jnp.float32),
        "BE1": jnp.zeros((NB, H, 1), jnp.float32),
        "WD": nrm((NB, H, 3)),                               # depthwise k=3
        "BD": nrm((NB, H, 1)),
        "G2": jnp.ones((NB, H, 1), jnp.float32),
        "BE2": jnp.zeros((NB, H, 1), jnp.float32),
        "W2": pad_axis(nrm((NB, Cres, H)), 1, Cres_pad).astype(jnp.bfloat16),
        "B2": pad_axis(nrm((NB, Cres, 1)), 1, Cres_pad),
        "slopes": jnp.full((NB, 2), 0.25, jnp.float32),      # nn.PReLU() default
        "dilations": dil.reshape(NB, 1),                     # int32, SMEM table
    }


# ---------------------------------------------------------------------------
# Main
# ---------------------------------------------------------------------------
if __name__ == "__main__":
    B = 2
    n_channels = 16
    hidden_channels = 32
    out_channels = 24          # speaker-embedding ("ref") dimension
    n_stacked_tcnblocks = 2
    n_tcnblocks = 2
    n_sp_channels = 2 ** n_tcnblocks   # = 4 (module default)
    T = 128

    key = jax.random.PRNGKey(0)
    kx, kr, kp = jax.random.split(key, 3)
    x = jax.random.normal(kx, (B, n_channels, T), dtype=jnp.float32)
    ref = jax.random.normal(kr, (B, out_channels), dtype=jnp.float32)

    params = init_params(kp, n_channels, hidden_channels, out_channels,
                         n_stacked_tcnblocks, n_tcnblocks, n_sp_channels)

    encs1, new_memory = speaker_extractor_forward(params, x, ref)
    jax.block_until_ready((encs1, new_memory))

    assert encs1.shape == (B, n_channels, T), encs1.shape
    assert new_memory.shape == (B, n_sp_channels, T), new_memory.shape
    assert encs1.dtype == jnp.float32 and new_memory.dtype == jnp.float32
    assert bool(jnp.all(jnp.isfinite(encs1))) and bool(jnp.all(jnp.isfinite(new_memory)))
    print("KERNEL_OK")
</pallas_src>

<mosaic_0001>
module attributes {stable_mosaic.version = 11 : i64} {
  func.func @kernel(%arg0: i32, %arg1: i32, %arg2: memref<1x16x128xf32, #tpu.memory_space<vmem>>, %arg3: memref<1x8x128xf32, #tpu.memory_space<vmem>>, %arg4: memref<1x1x32x1xf32, #tpu.memory_space<vmem>>, %arg5: memref<4x1xi32, #tpu.memory_space<smem>>, %arg6: memref<4x2xf32, #tpu.memory_space<smem>>, %arg7: memref<16x1xf32, #tpu.memory_space<vmem>>, %arg8: memref<16x1xf32, #tpu.memory_space<vmem>>, %arg9: memref<16x16xbf16, #tpu.memory_space<vmem>>, %arg10: memref<16x1xf32, #tpu.memory_space<vmem>>, %arg11: memref<1x32x24xbf16, #tpu.memory_space<vmem>>, %arg12: memref<1x32x1xf32, #tpu.memory_space<vmem>>, %arg13: memref<1x32x1xf32, #tpu.memory_space<vmem>>, %arg14: memref<1x32x1xf32, #tpu.memory_space<vmem>>, %arg15: memref<1x32x3xf32, #tpu.memory_space<vmem>>, %arg16: memref<1x32x1xf32, #tpu.memory_space<vmem>>, %arg17: memref<1x32x1xf32, #tpu.memory_space<vmem>>, %arg18: memref<1x32x1xf32, #tpu.memory_space<vmem>>, %arg19: memref<1x24x32xbf16, #tpu.memory_space<vmem>>, %arg20: memref<1x24x1xf32, #tpu.memory_space<vmem>>, %arg21: memref<16x16xbf16, #tpu.memory_space<vmem>>, %arg22: memref<16x1xf32, #tpu.memory_space<vmem>>, %arg23: memref<1x16x128xf32, #tpu.memory_space<vmem>>, %arg24: memref<1x8x128xf32, #tpu.memory_space<vmem>>, %arg25: memref<24x128xf32, #tpu.memory_space<vmem>>) attributes {dimension_semantics = [#tpu.dimension_semantics<parallel>, #tpu.dimension_semantics<arbitrary>], iteration_bounds = array<i64: 2, 4>, scalar_prefetch = 0 : i64, scratch_operands = 1 : i64, tpu.core_type = #tpu.core_type<tc>, window_params = [{transform_indices = @transform_0, window_bounds = array<i64: 1, 16, 128>}, {transform_indices = @transform_1, window_bounds = array<i64: 1, 8, 128>}, {transform_indices = @transform_2, window_bounds = array<i64: 1, 1, 32, 1>}, {transform_indices = @transform_3, window_bounds = array<i64: 4, 1>}, {transform_indices = @transform_4, window_bounds = array<i64: 4, 2>}, {pipeline_mode = #tpu.pipeline_mode<synchronous>, transform_indices = @transform_5, window_bounds = array<i64: 16, 1>}, {pipeline_mode = #tpu.pipeline_mode<synchronous>, transform_indices = @transform_6, window_bounds = array<i64: 16, 1>}, {pipeline_mode = #tpu.pipeline_mode<synchronous>, transform_indices = @transform_7, window_bounds = array<i64: 16, 16>}, {pipeline_mode = #tpu.pipeline_mode<synchronous>, transform_indices = @transform_8, window_bounds = array<i64: 16, 1>}, {transform_indices = @transform_9, window_bounds = array<i64: 1, 32, 24>}, {transform_indices = @transform_10, window_bounds = array<i64: 1, 32, 1>}, {transform_indices = @transform_11, window_bounds = array<i64: 1, 32, 1>}, {transform_indices = @transform_12, window_bounds = array<i64: 1, 32, 1>}, {transform_indices = @transform_13, window_bounds = array<i64: 1, 32, 3>}, {transform_indices = @transform_14, window_bounds = array<i64: 1, 32, 1>}, {transform_indices = @transform_15, window_bounds = array<i64: 1, 32, 1>}, {transform_indices = @transform_16, window_bounds = array<i64: 1, 32, 1>}, {transform_indices = @transform_17, window_bounds = array<i64: 1, 24, 32>}, {transform_indices = @transform_18, window_bounds = array<i64: 1, 24, 1>}, {pipeline_mode = #tpu.pipeline_mode<synchronous>, transform_indices = @transform_19, window_bounds = array<i64: 16, 16>}, {pipeline_mode = #tpu.pipeline_mode<synchronous>, transform_indices = @transform_20, window_bounds = array<i64: 16, 1>}, {transform_indices = @transform_21, window_bounds = array<i64: 1, 16, 128>}, {transform_indices = @transform_22, window_bounds = array<i64: 1, 8, 128>}]} {
    %c0_i32 = arith.constant 0 : i32
    %0 = arith.cmpi eq, %arg1, %c0_i32 : i32
    %1 = arith.extui %0 : i1 to i32
    %c0_i32_0 = arith.constant 0 : i32
    %2 = arith.cmpi ne, %1, %c0_i32_0 : i32
    scf.if %2 {
      %c0_59 = arith.constant 0 : index
      %c0_60 = arith.constant 0 : index
      %c0_61 = arith.constant 0 : index
      %135 = vector.load %arg2[%c0_59, %c0_60, %c0_61] : memref<1x16x128xf32, #tpu.memory_space<vmem>>, vector<1x16x128xf32>
      %136 = vector.shape_cast %135 : vector<1x16x128xf32> to vector<16x128xf32>
      %cst_62 = arith.constant dense<0.000000e+00> : vector<128xf32>
      %137 = vector.multi_reduction <add>, %136, %cst_62 [0] : vector<16x128xf32> to vector<128xf32>
      %138 = vector.shape_cast %137 : vector<128xf32> to vector<1x128xf32>
      %cst_63 = arith.constant 6.250000e-02 : f32
      %139 = vector.broadcast %cst_63 : f32 to vector<1x128xf32>
      %140 = arith.mulf %138, %139 : vector<1x128xf32>
      %141 = arith.mulf %136, %136 : vector<16x128xf32>
      %cst_64 = arith.constant dense<0.000000e+00> : vector<128xf32>
      %142 = vector.multi_reduction <add>, %141, %cst_64 [0] : vector<16x128xf32> to vector<128xf32>
      %143 = vector.shape_cast %142 : vector<128xf32> to vector<1x128xf32>
      %cst_65 = arith.constant 6.250000e-02 : f32
      %144 = vector.broadcast %cst_65 : f32 to vector<1x128xf32>
      %145 = arith.mulf %143, %144 : vector<1x128xf32>
      %146 = arith.mulf %140, %140 : vector<1x128xf32>
      %147 = arith.subf %145, %146 : vector<1x128xf32>
      %cst_66 = arith.constant 0.000000e+00 : f32
      %148 = vector.broadcast %cst_66 : f32 to vector<1x128xf32>
      %149 = arith.maximumf %147, %148 : vector<1x128xf32>
      %150 = vector.broadcast %140 : vector<1x128xf32> to vector<16x128xf32>
      %151 = arith.subf %136, %150 : vector<16x128xf32>
      %cst_67 = arith.constant 9.99999974E-6 : f32
      %152 = vector.broadcast %cst_67 : f32 to vector<1x128xf32>
      %153 = arith.addf %149, %152 : vector<1x128xf32>
      %154 = math.rsqrt %153 : vector<1x128xf32>
      %155 = vector.broadcast %154 : vector<1x128xf32> to vector<16x128xf32>
      %156 = arith.mulf %151, %155 : vector<16x128xf32>
      %c0_68 = arith.constant 0 : index
      %c0_69 = arith.constant 0 : index
      %157 = vector.load %arg7[%c0_68, %c0_69] : memref<16x1xf32, #tpu.memory_space<vmem>>, vector<16x1xf32>
      %158 = vector.broadcast %157 : vector<16x1xf32> to vector<16x128xf32>
      %159 = arith.mulf %156, %158 : vector<16x128xf32>
      %c0_70 = arith.constant 0 : index
      %c0_71 = arith.constant 0 : index
      %160 = vector.load %arg8[%c0_70, %c0_71] : memref<16x1xf32, #tpu.memory_space<vmem>>, vector<16x1xf32>
      %161 = vector.broadcast %160 : vector<16x1xf32> to vector<16x128xf32>
      %162 = arith.addf %159, %161 : vector<16x128xf32>
      %c0_72 = arith.constant 0 : index
      %c0_73 = arith.constant 0 : index
      %163 = vector.load %arg9[%c0_72, %c0_73] : memref<16x16xbf16, #tpu.memory_space<vmem>>, vector<16x16xbf16>
      %164 = arith.truncf %162 : vector<16x128xf32> to vector<16x128xbf16>
      %cst_74 = arith.constant dense<0.000000e+00> : vector<16x128xf32>
      %165 = tpu.matmul %163, %164, %cst_74 {dimension_numbers = #tpu.dot_dimension_numbers<[1], [0], [0], [1], [0, 0, 1, 1], [], []>} : vector<16x16xbf16>, vector<16x128xbf16>, vector<16x128xf32> -> vector<16x128xf32>
      %c0_75 = arith.constant 0 : index
      %c0_76 = arith.constant 0 : index
      %166 = vector.load %arg10[%c0_75, %c0_76] : memref<16x1xf32, #tpu.memory_space<vmem>>, vector<16x1xf32>
      %167 = vector.broadcast %166 : vector<16x1xf32> to vector<16x128xf32>
      %168 = arith.addf %165, %167 : vector<16x128xf32>
      %c0_77 = arith.constant 0 : index
      %c0_78 = arith.constant 0 : index
      %169 = vector.load %arg25[%c0_77, %c0_78] : memref<24x128xf32, #tpu.memory_space<vmem>>, vector<16x128xf32>
      tpu.vector_store %arg25[%c0_77, %c0_78], %168 {strides = array<i32>} : memref<24x128xf32, #tpu.memory_space<vmem>>, vector<16x128xf32>,
      %c0_79 = arith.constant 0 : index
      %c0_80 = arith.constant 0 : index
      %c0_81 = arith.constant 0 : index
      %170 = vector.load %arg3[%c0_79, %c0_80, %c0_81] : memref<1x8x128xf32, #tpu.memory_space<vmem>>, vector<1x8x128xf32>
      %171 = vector.shape_cast %170 : vector<1x8x128xf32> to vector<8x128xf32>
      %c16 = arith.constant 16 : index
      %c0_82 = arith.constant 0 : index
      %172 = vector.load %arg25[%c16, %c0_82] : memref<24x128xf32, #tpu.memory_space<vmem>>, vector<8x128xf32>
      tpu.vector_store %arg25[%c16, %c0_82], %171 {strides = array<i32>} : memref<24x128xf32, #tpu.memory_space<vmem>>, vector<8x128xf32>,
    } else {
    }
    %c0 = arith.constant 0 : index
    %c0_1 = arith.constant 0 : index
    %3 = vector.load %arg25[%c0, %c0_1] : memref<24x128xf32, #tpu.memory_space<vmem>>, vector<24x128xf32>
    %c0_2 = arith.constant 0 : index
    %c0_3 = arith.constant 0 : index
    %c0_4 = arith.constant 0 : index
    %4 = vector.load %arg11[%c0_2, %c0_3, %c0_4] : memref<1x32x24xbf16, #tpu.memory_space<vmem>>, vector<1x32x24xbf16>
    %5 = vector.shape_cast %4 : vector<1x32x24xbf16> to vector<32x24xbf16>
    %6 = arith.truncf %3 : vector<24x128xf32> to vector<24x128xbf16>
    %cst = arith.constant dense<0.000000e+00> : vector<32x128xf32>
    %7 = tpu.matmul %5, %6, %cst {dimension_numbers = #tpu.dot_dimension_numbers<[1], [0], [0], [1], [0, 0, 1, 1], [], []>} : vector<32x24xbf16>, vector<24x128xbf16>, vector<32x128xf32> -> vector<32x128xf32>
    %c0_5 = arith.constant 0 : index
    %c0_6 = arith.constant 0 : index
    %c0_7 = arith.constant 0 : index
    %8 = vector.load %arg12[%c0_5, %c0_6, %c0_7] : memref<1x32x1xf32, #tpu.memory_space<vmem>>, vector<1x32x1xf32>
    %9 = vector.shape_cast %8 : vector<1x32x1xf32> to vector<32x1xf32>
    %10 = vector.broadcast %9 : vector<32x1xf32> to vector<32x128xf32>
    %11 = arith.addf %7, %10 : vector<32x128xf32>
    %c0_8 = arith.constant 0 : index
    %c0_9 = arith.constant 0 : index
    %c0_10 = arith.constant 0 : index
    %c0_11 = arith.constant 0 : index
    %12 = vector.load %arg4[%c0_8, %c0_9, %c0_10, %c0_11] : memref<1x1x32x1xf32, #tpu.memory_space<vmem>>, vector<1x1x32x1xf32>
    %13 = vector.shape_cast %12 : vector<1x1x32x1xf32> to vector<32x1xf32>
    %14 = vector.broadcast %13 : vector<32x1xf32> to vector<32x128xf32>
    %15 = arith.addf %11, %14 : vector<32x128xf32>
    %16 = arith.index_cast %arg1 : i32 to index
    %c0_12 = arith.constant 0 : index
    %17 = memref.load %arg6[%16, %c0_12] : memref<4x2xf32, #tpu.memory_space<smem>>
    %cst_13 = arith.constant 0.000000e+00 : f32
    %18 = vector.broadcast %cst_13 : f32 to vector<32x128xf32>
    %19 = arith.cmpf ogt, %15, %18 : vector<32x128xf32>
    %20 = vector.broadcast %17 : f32 to vector<32x128xf32>
    %21 = arith.mulf %20, %15 : vector<32x128xf32>
    %22 = arith.select %19, %15, %21 : vector<32x128xi1>, vector<32x128xf32>
    %23 = vector.shape_cast %22 : vector<32x128xf32> to vector<1x32x128xf32>
    %cst_14 = arith.constant dense<0.000000e+00> : vector<1xf32>
    %24 = vector.multi_reduction <add>, %23, %cst_14 [1, 2] : vector<1x32x128xf32> to vector<1xf32>
    %25 = vector.shape_cast %24 : vector<1xf32> to vector<1x1x1xf32>
    %26 = vector.extract %25[0, 0, 0] : f32 from vector<1x1x1xf32>
    %cst_15 = arith.constant 2.44140625E-4 : f32
    %27 = arith.mulf %26, %cst_15 : f32
    %28 = arith.mulf %22, %22 : vector<32x128xf32>
    %29 = vector.shape_cast %28 : vector<32x128xf32> to vector<1x32x128xf32>
    %cst_16 = arith.constant dense<0.000000e+00> : vector<1xf32>
    %30 = vector.multi_reduction <add>, %29, %cst_16 [1, 2] : vector<1x32x128xf32> to vector<1xf32>
    %31 = vector.shape_cast %30 : vector<1xf32> to vector<1x1x1xf32>
    %32 = vector.extract %31[0, 0, 0] : f32 from vector<1x1x1xf32>
    %cst_17 = arith.constant 2.44140625E-4 : f32
    %33 = arith.mulf %32, %cst_17 : f32
    %34 = arith.mulf %27, %27 : f32
    %35 = arith.subf %33, %34 : f32
    %cst_18 = arith.constant 0.000000e+00 : f32
    %36 = arith.maximumf %35, %cst_18 : f32
    %37 = vector.broadcast %27 : f32 to vector<32x128xf32>
    %38 = arith.subf %22, %37 : vector<32x128xf32>
    %cst_19 = arith.constant 9.99999974E-6 : f32
    %39 = arith.addf %36, %cst_19 : f32
    %40 = math.rsqrt %39 : f32
    %41 = vector.broadcast %40 : f32 to vector<32x128xf32>
    %42 = arith.mulf %38, %41 : vector<32x128xf32>
    %c0_20 = arith.constant 0 : index
    %c0_21 = arith.constant 0 : index
    %c0_22 = arith.constant 0 : index
    %43 = vector.load %arg13[%c0_20, %c0_21, %c0_22] : memref<1x32x1xf32, #tpu.memory_space<vmem>>, vector<1x32x1xf32>
    %44 = vector.shape_cast %43 : vector<1x32x1xf32> to vector<32x1xf32>
    %45 = vector.broadcast %44 : vector<32x1xf32> to vector<32x128xf32>
    %46 = arith.mulf %42, %45 : vector<32x128xf32>
    %c0_23 = arith.constant 0 : index
    %c0_24 = arith.constant 0 : index
    %c0_25 = arith.constant 0 : index
    %47 = vector.load %arg14[%c0_23, %c0_24, %c0_25] : memref<1x32x1xf32, #tpu.memory_space<vmem>>, vector<1x32x1xf32>
    %48 = vector.shape_cast %47 : vector<1x32x1xf32> to vector<32x1xf32>
    %49 = vector.broadcast %48 : vector<32x1xf32> to vector<32x128xf32>
    %50 = arith.addf %46, %49 : vector<32x128xf32>
    %51 = arith.index_cast %arg1 : i32 to index
    %c0_26 = arith.constant 0 : index
    %52 = memref.load %arg5[%51, %c0_26] : memref<4x1xi32, #tpu.memory_space<smem>>
    %53 = tpu.iota {dimensions = array<i32: 1>} : vector<1x128xi32>
    %54 = vector.broadcast %52 : i32 to vector<1x128xi32>
    %55 = arith.cmpi sge, %53, %54 : vector<1x128xi32>
    %56 = tpu.dynamic_rotate %50 by %52 dim 1 : vector<32x128xf32>, i32 -> vector<32x128xf32>
    %cst_27 = arith.constant 0.000000e+00 : f32
    %57 = vector.shape_cast %55 : vector<1x128xi1> to vector<1x128xi1>
    %58 = vector.broadcast %57 : vector<1x128xi1> to vector<32x128xi1>
    %59 = vector.broadcast %cst_27 : f32 to vector<32x128xf32>
    %60 = arith.select %58, %56, %59 : vector<32x128xi1>, vector<32x128xf32>
    %c128_i32 = arith.constant 128 : i32
    %61 = arith.subi %c128_i32, %52 : i32
    %62 = vector.broadcast %61 : i32 to vector<1x128xi32>
    %63 = arith.cmpi slt, %53, %62 : vector<1x128xi32>
    %c128_i32_28 = arith.constant 128 : i32
    %64 = arith.subi %c128_i32_28, %52 : i32
    %65 = tpu.dynamic_rotate %50 by %64 dim 1 : vector<32x128xf32>, i32 -> vector<32x128xf32>
    %cst_29 = arith.constant 0.000000e+00 : f32
    %66 = vector.shape_cast %63 : vector<1x128xi1> to vector<1x128xi1>
    %67 = vector.broadcast %66 : vector<1x128xi1> to vector<32x128xi1>
    %68 = vector.broadcast %cst_29 : f32 to vector<32x128xf32>
    %69 = arith.select %67, %65, %68 : vector<32x128xi1>, vector<32x128xf32>
    %c0_30 = arith.constant 0 : index
    %c0_31 = arith.constant 0 : index
    %c0_32 = arith.constant 0 : index
    %70 = vector.load %arg15[%c0_30, %c0_31, %c0_32] : memref<1x32x3xf32, #tpu.memory_space<vmem>>, vector<1x32x3xf32>
    %71 = vector.shape_cast %70 : vector<1x32x3xf32> to vector<32x3xf32>
    %72 = vector.extract_strided_slice %71 {offsets = [0, 0], sizes = [32, 1], strides = [1, 1]} : vector<32x3xf32> to vector<32x1xf32>
    %73 = vector.broadcast %72 : vector<32x1xf32> to vector<32x128xf32>
    %74 = arith.mulf %73, %60 : vector<32x128xf32>
    %75 = vector.extract_strided_slice %71 {offsets = [0, 1], sizes = [32, 1], strides = [1, 1]} : vector<32x3xf32> to vector<32x1xf32>
    %76 = vector.broadcast %75 : vector<32x1xf32> to vector<32x128xf32>
    %77 = arith.mulf %76, %50 : vector<32x128xf32>
    %78 = arith.addf %74, %77 : vector<32x128xf32>
    %79 = vector.extract_strided_slice %71 {offsets = [0, 2], sizes = [32, 1], strides = [1, 1]} : vector<32x3xf32> to vector<32x1xf32>
    %80 = vector.broadcast %79 : vector<32x1xf32> to vector<32x128xf32>
    %81 = arith.mulf %80, %69 : vector<32x128xf32>
    %82 = arith.addf %78, %81 : vector<32x128xf32>
    %c0_33 = arith.constant 0 : index
    %c0_34 = arith.constant 0 : index
    %c0_35 = arith.constant 0 : index
    %83 = vector.load %arg16[%c0_33, %c0_34, %c0_35] : memref<1x32x1xf32, #tpu.memory_space<vmem>>, vector<1x32x1xf32>
    %84 = vector.shape_cast %83 : vector<1x32x1xf32> to vector<32x1xf32>
    %85 = vector.broadcast %84 : vector<32x1xf32> to vector<32x128xf32>
    %86 = arith.addf %82, %85 : vector<32x128xf32>
    %87 = arith.index_cast %arg1 : i32 to index
    %c1 = arith.constant 1 : index
    %88 = memref.load %arg6[%87, %c1] : memref<4x2xf32, #tpu.memory_space<smem>>
    %cst_36 = arith.constant 0.000000e+00 : f32
    %89 = vector.broadcast %cst_36 : f32 to vector<32x128xf32>
    %90 = arith.cmpf ogt, %86, %89 : vector<32x128xf32>
    %91 = vector.broadcast %88 : f32 to vector<32x128xf32>
    %92 = arith.mulf %91, %86 : vector<32x128xf32>
    %93 = arith.select %90, %86, %92 : vector<32x128xi1>, vector<32x128xf32>
    %94 = vector.shape_cast %93 : vector<32x128xf32> to vector<1x32x128xf32>
    %cst_37 = arith.constant dense<0.000000e+00> : vector<1xf32>
    %95 = vector.multi_reduction <add>, %94, %cst_37 [1, 2] : vector<1x32x128xf32> to vector<1xf32>
    %96 = vector.shape_cast %95 : vector<1xf32> to vector<1x1x1xf32>
    %97 = vector.extract %96[0, 0, 0] : f32 from vector<1x1x1xf32>
    %cst_38 = arith.constant 2.44140625E-4 : f32
    %98 = arith.mulf %97, %cst_38 : f32
    %99 = arith.mulf %93, %93 : vector<32x128xf32>
    %100 = vector.shape_cast %99 : vector<32x128xf32> to vector<1x32x128xf32>
    %cst_39 = arith.constant dense<0.000000e+00> : vector<1xf32>
    %101 = vector.multi_reduction <add>, %100, %cst_39 [1, 2] : vector<1x32x128xf32> to vector<1xf32>
    %102 = vector.shape_cast %101 : vector<1xf32> to vector<1x1x1xf32>
    %103 = vector.extract %102[0, 0, 0] : f32 from vector<1x1x1xf32>
    %cst_40 = arith.constant 2.44140625E-4 : f32
    %104 = arith.mulf %103, %cst_40 : f32
    %105 = arith.mulf %98, %98 : f32
    %106 = arith.subf %104, %105 : f32
    %cst_41 = arith.constant 0.000000e+00 : f32
    %107 = arith.maximumf %106, %cst_41 : f32
    %108 = vector.broadcast %98 : f32 to vector<32x128xf32>
    %109 = arith.subf %93, %108 : vector<32x128xf32>
    %cst_42 = arith.constant 9.99999974E-6 : f32
    %110 = arith.addf %107, %cst_42 : f32
    %111 = math.rsqrt %110 : f32
    %112 = vector.broadcast %111 : f32 to vector<32x128xf32>
    %113 = arith.mulf %109, %112 : vector<32x128xf32>
    %c0_43 = arith.constant 0 : index
    %c0_44 = arith.constant 0 : index
    %c0_45 = arith.constant 0 : index
    %114 = vector.load %arg17[%c0_43, %c0_44, %c0_45] : memref<1x32x1xf32, #tpu.memory_space<vmem>>, vector<1x32x1xf32>
    %115 = vector.shape_cast %114 : vector<1x32x1xf32> to vector<32x1xf32>
    %116 = vector.broadcast %115 : vector<32x1xf32> to vector<32x128xf32>
    %117 = arith.mulf %113, %116 : vector<32x128xf32>
    %c0_46 = arith.constant 0 : index
    %c0_47 = arith.constant 0 : index
    %c0_48 = arith.constant 0 : index
    %118 = vector.load %arg18[%c0_46, %c0_47, %c0_48] : memref<1x32x1xf32, #tpu.memory_space<vmem>>, vector<1x32x1xf32>
    %119 = vector.shape_cast %118 : vector<1x32x1xf32> to vector<32x1xf32>
    %120 = vector.broadcast %119 : vector<32x1xf32> to vector<32x128xf32>
    %121 = arith.addf %117, %120 : vector<32x128xf32>
    %c0_49 = arith.constant 0 : index
    %c0_50 = arith.constant 0 : index
    %c0_51 = arith.constant 0 : index
    %122 = vector.load %arg19[%c0_49, %c0_50, %c0_51] : memref<1x24x32xbf16, #tpu.memory_space<vmem>>, vector<1x24x32xbf16>
    %123 = vector.shape_cast %122 : vector<1x24x32xbf16> to vector<24x32xbf16>
    %124 = arith.truncf %121 : vector<32x128xf32> to vector<32x128xbf16>
    %cst_52 = arith.constant dense<0.000000e+00> : vector<24x128xf32>
    %125 = tpu.matmul %123, %124, %cst_52 {dimension_numbers = #tpu.dot_dimension_numbers<[1], [0], [0], [1], [0, 0, 1, 1], [], []>} : vector<24x32xbf16>, vector<32x128xbf16>, vector<24x128xf32> -> vector<24x128xf32>
    %c0_53 = arith.constant 0 : index
    %c0_54 = arith.constant 0 : index
    %c0_55 = arith.constant 0 : index
    %126 = vector.load %arg20[%c0_53, %c0_54, %c0_55] : memref<1x24x1xf32, #tpu.memory_space<vmem>>, vector<1x24x1xf32>
    %127 = vector.shape_cast %126 : vector<1x24x1xf32> to vector<24x1xf32>
    %128 = vector.broadcast %127 : vector<24x1xf32> to vector<24x128xf32>
    %129 = arith.addf %125, %128 : vector<24x128xf32>
    %130 = arith.addf %3, %129 : vector<24x128xf32>
    %c0_56 = arith.constant 0 : index
    %c0_57 = arith.constant 0 : index
    %131 = vector.load %arg25[%c0_56, %c0_57] : memref<24x128xf32, #tpu.memory_space<vmem>>, vector<24x128xf32>
    tpu.vector_store %arg25[%c0_56, %c0_57], %130 {strides = array<i32>} : memref<24x128xf32, #tpu.memory_space<vmem>>, vector<24x128xf32>,
    %c3_i32 = arith.constant 3 : i32
    %132 = arith.cmpi eq, %arg1, %c3_i32 : i32
    %133 = arith.extui %132 : i1 to i32
    %c0_i32_58 = arith.constant 0 : i32
    %134 = arith.cmpi ne, %133, %c0_i32_58 : i32
    scf.if %134 {
      %c0_59 = arith.constant 0 : index
      %c0_60 = arith.constant 0 : index
      %135 = vector.load %arg25[%c0_59, %c0_60] : memref<24x128xf32, #tpu.memory_space<vmem>>, vector<16x128xf32>
      %c0_61 = arith.constant 0 : index
      %c0_62 = arith.constant 0 : index
      %136 = vector.load %arg21[%c0_61, %c0_62] : memref<16x16xbf16, #tpu.memory_space<vmem>>, vector<16x16xbf16>
      %137 = arith.truncf %135 : vector<16x128xf32> to vector<16x128xbf16>
      %cst_63 = arith.constant dense<0.000000e+00> : vector<16x128xf32>
      %138 = tpu.matmul %136, %137, %cst_63 {dimension_numbers = #tpu.dot_dimension_numbers<[1], [0], [0], [1], [0, 0, 1, 1], [], []>} : vector<16x16xbf16>, vector<16x128xbf16>, vector<16x128xf32> -> vector<16x128xf32>
      %c0_64 = arith.constant 0 : index
      %c0_65 = arith.constant 0 : index
      %139 = vector.load %arg22[%c0_64, %c0_65] : memref<16x1xf32, #tpu.memory_space<vmem>>, vector<16x1xf32>
      %140 = vector.broadcast %139 : vector<16x1xf32> to vector<16x128xf32>
      %141 = arith.addf %138, %140 : vector<16x128xf32>
      %cst_66 = arith.constant 0.000000e+00 : f32
      %142 = vector.broadcast %cst_66 : f32 to vector<16x128xf32>
      %143 = arith.maximumf %141, %142 : vector<16x128xf32>
      %c0_67 = arith.constant 0 : index
      %c0_68 = arith.constant 0 : index
      %c0_69 = arith.constant 0 : index
      %144 = vector.load %arg2[%c0_67, %c0_68, %c0_69] : memref<1x16x128xf32, #tpu.memory_space<vmem>>, vector<1x16x128xf32>
      %145 = vector.shape_cast %144 : vector<1x16x128xf32> to vector<16x128xf32>
      %146 = arith.mulf %145, %143 : vector<16x128xf32>
      %c0_70 = arith.constant 0 : index
      %c0_71 = arith.constant 0 : index
      %c0_72 = arith.constant 0 : index
      %147 = vector.load %arg23[%c0_70, %c0_71, %c0_72] : memref<1x16x128xf32, #tpu.memory_space<vmem>>, vector<1x16x128xf32>
      %148 = vector.shape_cast %147 : vector<1x16x128xf32> to vector<16x128xf32>
      %149 = vector.shape_cast %146 : vector<16x128xf32> to vector<1x16x128xf32>
      tpu.vector_store %arg23[%c0_70, %c0_71, %c0_72], %149 {strides = array<i32>} : memref<1x16x128xf32, #tpu.memory_space<vmem>>, vector<1x16x128xf32>,
      %c16 = arith.constant 16 : index
      %c0_73 = arith.constant 0 : index
      %150 = vector.load %arg25[%c16, %c0_73] : memref<24x128xf32, #tpu.memory_space<vmem>>, vector<8x128xf32>
      %c0_74 = arith.constant 0 : index
      %c0_75 = arith.constant 0 : index
      %c0_76 = arith.constant 0 : index
      %151 = vector.load %arg24[%c0_74, %c0_75, %c0_76] : memref<1x8x128xf32, #tpu.memory_space<vmem>>, vector<1x8x128xf32>
      %152 = vector.shape_cast %151 : vector<1x8x128xf32> to vector<8x128xf32>
      %153 = vector.shape_cast %150 : vector<8x128xf32> to vector<1x8x128xf32>
      tpu.vector_store %arg24[%c0_74, %c0_75, %c0_76], %153 {strides = array<i32>} : memref<1x8x128xf32, #tpu.memory_space<vmem>>, vector<1x8x128xf32>,
    } else {
    }
    return
  }
  func.func @transform_0(%arg0: i32, %arg1: i32) -> (i32, i32, i32) {
    %c0_i32 = arith.constant 0 : i32
    %c0_i32_0 = arith.constant 0 : i32
    %c0_i32_1 = arith.constant 0 : i32
    return %arg0, %c0_i32, %c0_i32_0 : i32, i32, i32
  }
  func.func @transform_1(%arg0: i32, %arg1: i32) -> (i32, i32, i32) {
    %c0_i32 = arith.constant 0 : i32
    %c0_i32_0 = arith.constant 0 : i32
    %c0_i32_1 = arith.constant 0 : i32
    return %arg0, %c0_i32, %c0_i32_0 : i32, i32, i32
  }
  func.func @transform_2(%arg0: i32, %arg1: i32) -> (i32, i32, i32, i32) {
    %c0_i32 = arith.constant 0 : i32
    %c0_i32_0 = arith.constant 0 : i32
    %c0_i32_1 = arith.constant 0 : i32
    return %arg0, %arg1, %c0_i32, %c0_i32_0 : i32, i32, i32, i32
  }
  func.func @transform_3(%arg0: i32, %arg1: i32) -> (i32, i32) {
    %c0_i32 = arith.constant 0 : i32
    %c0_i32_0 = arith.constant 0 : i32
    %c0_i32_1 = arith.constant 0 : i32
    return %c0_i32, %c0_i32_0 : i32, i32
  }
  func.func @transform_4(%arg0: i32, %arg1: i32) -> (i32, i32) {
    %c0_i32 = arith.constant 0 : i32
    %c0_i32_0 = arith.constant 0 : i32
    %c0_i32_1 = arith.constant 0 : i32
    return %c0_i32, %c0_i32_0 : i32, i32
  }
  func.func @transform_5(%arg0: i32, %arg1: i32) -> (i32, i32) {
    %c0_i32 = arith.constant 0 : i32
    %c0_i32_0 = arith.constant 0 : i32
    %c0_i32_1 = arith.constant 0 : i32
    return %c0_i32, %c0_i32_0 : i32, i32
  }
  func.func @transform_6(%arg0: i32, %arg1: i32) -> (i32, i32) {
    %c0_i32 = arith.constant 0 : i32
    %c0_i32_0 = arith.constant 0 : i32
    %c0_i32_1 = arith.constant 0 : i32
    return %c0_i32, %c0_i32_0 : i32, i32
  }
  func.func @transform_7(%arg0: i32, %arg1: i32) -> (i32, i32) {
    %c0_i32 = arith.constant 0 : i32
    %c0_i32_0 = arith.constant 0 : i32
    %c0_i32_1 = arith.constant 0 : i32
    return %c0_i32, %c0_i32_0 : i32, i32
  }
  func.func @transform_8(%arg0: i32, %arg1: i32) -> (i32, i32) {
    %c0_i32 = arith.constant 0 : i32
    %c0_i32_0 = arith.constant 0 : i32
    %c0_i32_1 = arith.constant 0 : i32
    return %c0_i32, %c0_i32_0 : i32, i32
  }
  func.func @transform_9(%arg0: i32, %arg1: i32) -> (i32, i32, i32) {
    %c0_i32 = arith.constant 0 : i32
    %c0_i32_0 = arith.constant 0 : i32
    %c0_i32_1 = arith.constant 0 : i32
    return %arg1, %c0_i32, %c0_i32_0 : i32, i32, i32
  }
  func.func @transform_10(%arg0: i32, %arg1: i32) -> (i32, i32, i32) {
    %c0_i32 = arith.constant 0 : i32
    %c0_i32_0 = arith.constant 0 : i32
    %c0_i32_1 = arith.constant 0 : i32
    return %arg1, %c0_i32, %c0_i32_0 : i32, i32, i32
  }
  func.func @transform_11(%arg0: i32, %arg1: i32) -> (i32, i32, i32) {
    %c0_i32 = arith.constant 0 : i32
    %c0_i32_0 = arith.constant 0 : i32
    %c0_i32_1 = arith.constant 0 : i32
    return %arg1, %c0_i32, %c0_i32_0 : i32, i32, i32
  }
  func.func @transform_12(%arg0: i32, %arg1: i32) -> (i32, i32, i32) {
    %c0_i32 = arith.constant 0 : i32
    %c0_i32_0 = arith.constant 0 : i32
    %c0_i32_1 = arith.constant 0 : i32
    return %arg1, %c0_i32, %c0_i32_0 : i32, i32, i32
  }
  func.func @transform_13(%arg0: i32, %arg1: i32) -> (i32, i32, i32) {
    %c0_i32 = arith.constant 0 : i32
    %c0_i32_0 = arith.constant 0 : i32
    %c0_i32_1 = arith.constant 0 : i32
    return %arg1, %c0_i32, %c0_i32_0 : i32, i32, i32
  }
  func.func @transform_14(%arg0: i32, %arg1: i32) -> (i32, i32, i32) {
    %c0_i32 = arith.constant 0 : i32
    %c0_i32_0 = arith.constant 0 : i32
    %c0_i32_1 = arith.constant 0 : i32
    return %arg1, %c0_i32, %c0_i32_0 : i32, i32, i32
  }
  func.func @transform_15(%arg0: i32, %arg1: i32) -> (i32, i32, i32) {
    %c0_i32 = arith.constant 0 : i32
    %c0_i32_0 = arith.constant 0 : i32
    %c0_i32_1 = arith.constant 0 : i32
    return %arg1, %c0_i32, %c0_i32_0 : i32, i32, i32
  }
  func.func @transform_16(%arg0: i32, %arg1: i32) -> (i32, i32, i32) {
    %c0_i32 = arith.constant 0 : i32
    %c0_i32_0 = arith.constant 0 : i32
    %c0_i32_1 = arith.constant 0 : i32
    return %arg1, %c0_i32, %c0_i32_0 : i32, i32, i32
  }
  func.func @transform_17(%arg0: i32, %arg1: i32) -> (i32, i32, i32) {
    %c0_i32 = arith.constant 0 : i32
    %c0_i32_0 = arith.constant 0 : i32
    %c0_i32_1 = arith.constant 0 : i32
    return %arg1, %c0_i32, %c0_i32_0 : i32, i32, i32
  }
  func.func @transform_18(%arg0: i32, %arg1: i32) -> (i32, i32, i32) {
    %c0_i32 = arith.constant 0 : i32
    %c0_i32_0 = arith.constant 0 : i32
    %c0_i32_1 = arith.constant 0 : i32
    return %arg1, %c0_i32, %c0_i32_0 : i32, i32, i32
  }
  func.func @transform_19(%arg0: i32, %arg1: i32) -> (i32, i32) {
    %c0_i32 = arith.constant 0 : i32
    %c0_i32_0 = arith.constant 0 : i32
    %c0_i32_1 = arith.constant 0 : i32
    return %c0_i32, %c0_i32_0 : i32, i32
  }
  func.func @transform_20(%arg0: i32, %arg1: i32) -> (i32, i32) {
    %c0_i32 = arith.constant 0 : i32
    %c0_i32_0 = arith.constant 0 : i32
    %c0_i32_1 = arith.constant 0 : i32
    return %c0_i32, %c0_i32_0 : i32, i32
  }
  func.func @transform_21(%arg0: i32, %arg1: i32) -> (i32, i32, i32) {
    %c0_i32 = arith.constant 0 : i32
    %c0_i32_0 = arith.constant 0 : i32
    %c0_i32_1 = arith.constant 0 : i32
    return %arg0, %c0_i32, %c0_i32_0 : i32, i32, i32
  }
  func.func @transform_22(%arg0: i32, %arg1: i32) -> (i32, i32, i32) {
    %c0_i32 = arith.constant 0 : i32
    %c0_i32_0 = arith.constant 0 : i32
    %c0_i32_1 = arith.constant 0 : i32
    return %arg0, %c0_i32, %c0_i32_0 : i32, i32, i32
  }
}

</mosaic_0001>

<bundles_post_ra>
// kernel: tpu_custom_call.1
= control target key start
LH: loop header
LB: loop body
LE: loop exit
PB: predicated region body
PF: predicated region fallthrough
CT: control target
= control target key end

     0   :  { %s3119_s0 = inlined_call_operand.vmem [shape: f32[2,16,128], index: 0, kind: input, shape index: {}]   ;;  %s3120_s1 = inlined_call_operand.vmem [shape: f32[2,8,128], index: 1, kind: input, shape index: {}]   ;;  %s3121_s2 = inlined_call_operand.vmem [shape: f32[2,4,32,1], index: 2, kind: input, shape index: {}]   ;;  %s3122_s3 = inlined_call_operand.vmem [shape: s32[4,1], index: 3, kind: input, shape index: {}]   ;;  %s3123_s4 = inlined_call_operand.vmem [shape: f32[4,2], index: 4, kind: input, shape index: {}]   ;;  %s3124_s5 = inlined_call_operand.vmem [shape: f32[16,1], index: 5, kind: input, shape index: {}]   ;;  %s3125_s6 = inlined_call_operand.vmem [shape: f32[16,1], index: 6, kind: input, shape index: {}]   ;;  %s3126_s7 = inlined_call_operand.vmem [shape: bf16[16,16], index: 7, kind: input, shape index: {}]   ;;  %s3127_s8 = inlined_call_operand.vmem [shape: f32[16,1], index: 8, kind: input, shape index: {}]   ;;  %s3128_s9 = inlined_call_operand.vmem [shape: bf16[4,32,24], index: 9, kind: input, shape index: {}]   ;;  %s3129_s10 = inlined_call_operand.vmem [shape: f32[4,32,1], index: 10, kind: input, shape index: {}]   ;;  %s3130_s11 = inlined_call_operand.vmem [shape: f32[4,32,1], index: 11, kind: input, shape index: {}]   ;;  %s3131_s12 = inlined_call_operand.vmem [shape: f32[4,32,1], index: 12, kind: input, shape index: {}]   ;;  %s3132_s13 = inlined_call_operand.vmem [shape: f32[4,32,3], index: 13, kind: input, shape index: {}]   ;;  %s3133_s14 = inlined_call_operand.vmem [shape: f32[4,32,1], index: 14, kind: input, shape index: {}]   ;;  %s3134_s15 = inlined_call_operand.vmem [shape: f32[4,32,1], index: 15, kind: input, shape index: {}]   ;;  %s3135_s16 = inlined_call_operand.vmem [shape: f32[4,32,1], index: 16, kind: input, shape index: {}]   ;;  %s3136_s17 = inlined_call_operand.vmem [shape: bf16[4,24,32], index: 17, kind: input, shape index: {}]   ;;  %s3137_s18 = inlined_call_operand.vmem [shape: f32[4,24,1], index: 18, kind: input, shape index: {}]   ;;  %s3138_s19 = inlined_call_operand.vmem [shape: bf16[16,16], index: 19, kind: input, shape index: {}]   ;;  %s3139_s20 = inlined_call_operand.vmem [shape: f32[16,1], index: 20, kind: input, shape index: {}]   ;;  %s3140_s21 = inlined_call_operand.hbm [shape: f32[2,16,128], index: 21, kind: output, shape index: {0}]   ;;  %s3141_s22 = inlined_call_operand.hbm [shape: f32[2,8,128], index: 22, kind: output, shape index: {1}]  }
   0x1   :  { %3169 = sst [smem:[#allocation29_spill]] %s3119_s0 }
   0x2   :  { %3170 = sst [smem:[#allocation30_spill]] %s3120_s1 }
   0x3   :  { %3171 = sst [smem:[#allocation31_spill]] %s3121_s2 }
   0x4   :  { %3172 = sst [smem:[#allocation32_spill]] %s3122_s3 }
   0x5   :  { %3173 = sst [smem:[#allocation33_spill]] %s3123_s4 }
   0x6   :  { %3174 = sst [smem:[#allocation34_spill]] %s3124_s5 }
   0x7   :  { %3175 = sst [smem:[#allocation35_spill]] %s3125_s6 }
   0x8   :  { %3176 = sst [smem:[#allocation36_spill]] %s3126_s7 }
   0x9   :  { %3177 = sst [smem:[#allocation37_spill]] %s3127_s8 }
   0xa   :  { %3178 = sst [smem:[#allocation38_spill]] %s3128_s9 }
   0xb   :  { %3179 = sst [smem:[#allocation39_spill]] %s3129_s10 }
   0xc   :  { %3180 = sst [smem:[#allocation40_spill]] %s3130_s11 }
   0xd   :  { %3181 = sst [smem:[#allocation41_spill]] %s3131_s12 }
   0xe   :  { %3182 = sst [smem:[#allocation42_spill]] %s3132_s13 }
   0xf   :  { %3183 = sst [smem:[#allocation43_spill]] %s3133_s14 }
  0x10   :  { %3184 = sst [smem:[#allocation44_spill]] %s3134_s15 }
  0x11   :  { %3185 = sst [smem:[#allocation45_spill]] %s3136_s17 }
  0x12   :  { %3186 = sst [smem:[#allocation46_spill]] %s3137_s18 }
  0x13   :  { %3187 = sst [smem:[#allocation47_spill]] %s3138_s19 }
  0x14   :  { %3188 = sst [smem:[#allocation48_spill]] %s3139_s20 }
  0x15   :  { %3189 = sst [smem:[#allocation49_spill]] %s3140_s21 }
  0x16   :  { %3190 = sst [smem:[#allocation50_spill]] %s3141_s22 }
  0x17   :  { %28 = vsyncpa [#allocation5], 0 }
  0x18   :  { %29 = vsyncpa [#allocation7], 0 }
  0x19   :  { %30 = vsyncpa [#allocation4], 0 }
  0x1a   :  { %32 = vsyncpa [#allocation4 + $0x1], 0 }
  0x1b   :  { %33 = vsyncpa [#allocation10], 0 }
  0x1c   :  { %35 = vsyncpa [#allocation10 + $0x1], 0  ;;  %s2665_s3 = smov 0   ;;  %s2667_s28 = smov 0  }
  0x1d   :  { %s2669_s29 = smov 0   ;;  %s2671_s30 = smov 0  }
  0x1e   :  { %s2673_s4 = smov 0   ;;  %s2675_s0 = smov 0  }
  0x1f   :  { %s2677_s23 = smov 0   ;;  %s2679_s1 = smov 0  }
  0x20 LB: > { %3191 = sst [smem:[#allocation15_spill]] %s2504_s3  ;;  %s2110_s5 = sadd.s32 4294967295, %s2532_s1   ;;  %s2532_s1 = sphi %s2679_s1, %s41_s1   ;;  %s2528_s23 = sphi %s2677_s23, %s3254_s23   ;;  %s2524_s0 = sphi %s2675_s0, %s3253_s0   ;;  %s2520_s4 = sphi %s2673_s4, %s3252_s4   ;;  %s2516_s30 = sphi %s2671_s30, %s3251_s30   ;;  %s2512_s29 = sphi %s2669_s29, %s3250_s29   ;;  %s2508_s28 = sphi %s2667_s28, %s3249_s28   ;;  %s2504_s3 = sphi %s2665_s3, %s3248_s3  }
  0x21   : > { %3192 = sst [smem:[#allocation16_spill]] %s2508_s28  ;;  %s2111_s24 = sadd.s32 4294967294, %s2532_s1  }
  0x22   : > { %3193 = sst [smem:[#allocation17_spill]] %s2512_s29  ;;  %s50_s6 = sadd.s32 1, %s2524_s0 }
  0x23   : > { %3194 = sst [smem:[#allocation18_spill]] %s2520_s4  ;;  %s53_s25 = sadd.s32 1, %s2528_s23 }
  0x24   : > { %3195 = sst [smem:[#allocation19_spill]] %s2524_s0  ;;  %p51_p0 = scmp.ge.s32.totalorder %s50_s6, 4 }
  0x25   : > { %3196 = sst [smem:[#allocation20_spill]] %s2528_s23  ;;  %s568_s26 = sadd.s32 1, %s2512_s29 }
  0x26   : > { %3197 = sst [smem:[#allocation21_spill]] %s2532_s1  ;;  %p578_p1 = scmp.ne.s32.totalorder %s2512_s29, %s2508_s28 }
  0x27   : > { %p579_p2 = scmp.eq.s32.totalorder %s2110_s5, 7  ;;  %s3256_s6 = smov (%p51_p0, %s50_s6), 0 }
  0x28   : > { %3198 = sst [smem:[#allocation22_spill]] %s3256_s6  ;;  %s3258_s25 = smov (!%p51_p0, %s53_s25), %s2528_s23 }
  0x29   : > { %p2715_p3 = por %p579_p2, %p578_p1  ;;  %p584_p4 = scmp.ne.s32.totalorder %s2508_s28, %s2504_s3 }
  0x2a   : > { %p55_p5 = scmp.ge.s32.totalorder %s3258_s25, 2  ;;  %p585_p6 = scmp.eq.s32.totalorder %s2111_s24, 7 }
  0x2b   : > { %s3199_s2 = scalar_select %p2715_p3, 1, 0 }
  0x2c   : > { %p2112_p7 = scmp.ge.s32.totalorder %s2532_s1, 1  ;;  %p618_p8 = scmp.lt.s32.totalorder %s2532_s1, 9 }
  0x2d   : > { %3200 = sst [smem:[#allocation23_spill]] %s3199_s2  ;;  %s3260_s25 = smov (%p55_p5, %s3258_s25), 0 }
  0x2e   : > { %3201 = sst [smem:[#allocation24_spill]] %s3260_s25  ;;  %p2725_p9 = por %p585_p6, %p584_p4 }
  0x2f   : > { %p2729_p10 = pnand %p2112_p7, %p618_p8  ;;  %s565_s0 = ssub.s32 %s2528_s23, %s3260_s25 }
  0x30   : > { %s3202_s27 = scalar_select %p2725_p9, 1, 0 }
  0x31   : > { %s3204_s6 = scalar_select %p2729_p10, 1, 0 }
  0x32   : > { %3203 = sst [smem:[#allocation25_spill]] %s3202_s27  ;;  %p566_p11 = scmp.eq.s32.totalorder %s565_s0, 0 }
  0x33   : > { %p2244_p12 = pneg %p2729_p10  ;;  %p2737_p13 = scmp.eq.s32.totalorder %s2110_s5, 0 }
  0x34   : > { %s3206_s22 = sld [smem:[#allocation32_spill]]  ;;  %s3209_s23 = sld [smem:[#allocation33_spill]] }
  0x35   : > { %s3205_s24 = scalar_select %p2737_p13, 1, 0 }
  0x36   : > { %s2745_s2 = scalar_select %p566_p11, %s2512_s29, %s568_s26  }
  0x37   : > { %p2749_p0 = pnand %p2737_p13, %p2244_p12 }
  0x38   : > { %3207 = sst [smem:[#allocation26_spill]] %s2745_s2 }
  0x39   : > { %p2370_p2 = pneg %p2749_p0 }
  0x3a   : > { %s631_s21 = sshll.u32 %s3206_s22, 4  ;;  %s642_s5 = sshll.u32 %s3209_s23, 4  ;;  %s632_s21 = int_to_ptr.vmem [resolvable:$true] %s631_s21  ;;  %s643_s5 = int_to_ptr.vmem [resolvable:$true] %s642_s5 }
  0x3b   : > { %s2368_s19 = scalar_lea.vmem %s632_s21, 64  ;;  %p2376_p6 = scmp.lt.s32.totalorder %s632_s21, %s632_s21 }
  0x3c   : > { %p2369_p1 = scmp.ne.s32.totalorder %s632_s21, %s2368_s19  ;;  %p2377_p7 = scmp.lt.s32.totalorder %s2368_s19, %s2368_s19 }
  0x3e   : > { %p2371_p4 = pnand %p2370_p2, %p2369_p1  ;;  %p2378_p8 = por %p2377_p7, %p2376_p6 }
  0x40   : > { %p2372_p5 = pneg %p2371_p4 }
  0x42   : > { %p2379_p11 = pnand %p2378_p8, %p2372_p5 }
  0x44   : > { %2382 = shalt.err (!%p2379_p11)
}
  0x45   : > { %s2534_s22 = smov [#allocation3]   ;;  %s2383_s3 = scalar_lea.vmem %s643_s5, 64 }
  0x46   : > { %2247 = dma.vmem_to_smem (!%p2749_p0), %s632_s21, 64, %s2534_s22, [#allocation5]  }
  0x47   : > { %p2384_p12 = scmp.ne.s32.totalorder %s643_s5, %s2383_s3  ;;  %p2391_p13 = scmp.lt.s32.totalorder %s643_s5, %s643_s5 }
  0x48   : > { %p2392_p10 = scmp.lt.s32.totalorder %s2383_s3, %s2383_s3 }
  0x49   : > { %p2386_p9 = pnand %p2384_p12, %p2370_p2 }
  0x4a   : > { %p2393_p1 = por %p2392_p10, %p2391_p13 }
  0x4b   : > { %p2387_p3 = pneg %p2386_p9 }
  0x4d   : > { %p2394_p4 = pnand %p2393_p1, %p2387_p3 }
  0x4f   : > { %2397 = shalt.err (!%p2394_p4)
}
  0x50   : > { %s2535_s23 = smov [#allocation6]   ;;  %p3210_p5 = scmp.ne.s32.totalorder %s3204_s6, 0 }
  0x51   : > { %2250 = dma.vmem_to_smem (!%p2749_p0), %s643_s5, 64, %s2535_s23, [#allocation7]  }
  0x52   : > { %780 = sbr.rel (%p3210_p5) target bundleno = 1966 (0x7ae), region = 104 }
  0x59   : > { %p3211_p6 = scmp.ne.s32.totalorder %s3205_s24, 0 }
  0x5b   : > { %2487 = dma.done.wait (%p3211_p6), [#allocation5], 64  }
  0x5c   : > { %2489 = vsyncadd (%p3211_p6), [#allocation5], 4294967232 }
  0x5d   : > { %2491 = dma.done.wait (%p3211_p6), [#allocation7], 64  }
  0x5e   : > { %2493 = vsyncadd (%p3211_p6), [#allocation7], 4294967232 }
  0x5f   : > { %790 = sfence }
  0x60   : > { %s2773_s19 = sand.u32 1, %s2508_s28   ;;  %p915_p3 = scmp.lt.s32.totalorder %s2520_s4, 1 }
  0x61   : > { %3212 = sst [smem:[#allocation27_spill]] %s2773_s19  ;;  %s2119_s21 = sshll.u32 %s2773_s19, 4 }
  0x62   : > { %s2120_s1 = sshll.u32 %s2773_s19, 3  ;;  %p926_p9 = scmp.lt.s32.totalorder %s2516_s30, 3 }
  0x63   : > { %s916_s6 = scalar_select %p915_p3, %s2520_s4, 1 }
  0x64   : > { %s3213_s0 = sld [smem:[#allocation29_spill]]  ;;  %s3215_s23 = sld [smem:[#allocation30_spill]] }
  0x65   : > { %s2167_s25 = sshll.u32 %s916_s6, 4  ;;  %s2123_s26 = sshll.u32 %s916_s6, 3 }
  0x66   : > { %s927_s29 = scalar_select %p926_p9, %s2516_s30, 3 }
  0x67   : > { %s3216_s9 = sld [smem:[#allocation38_spill]]  ;;  %s3217_s24 = sld [smem:[#allocation31_spill]] }
  0x68   : > { %s2124_s28 = sshll.u32 %s927_s29, 2  ;;  %s2168_s20 = sshll.u32 %s927_s29, 4 }
  0x69   : > { %s930_s7 = sadd.s32 %s2167_s25, %s2124_s28  ;;  %s2169_s18 = sshll.u32 %s927_s29, 5 }
  0x6a   : > { %s2783_s5 = scalar_lea.vmem %s3213_s0, %s2167_s25  ;;  %s2788_s2 = scalar_lea.vmem %s3215_s23, %s2123_s26 }
  0x6b   : > { %3214 = sst [smem:[#allocation28_spill]] %s2783_s5  ;;  %s2126_s6 = sshll.u32 %s930_s7, 3 }
  0x6c   : > { %s3218_s10 = sld [smem:[#allocation39_spill]]  ;;  %s3219_s11 = sld [smem:[#allocation40_spill]] }
  0x6d   : > { %s2794_s4 = scalar_lea.vmem %s3216_s9, %s2168_s20  ;;  %s2799_s0 = scalar_lea.vmem %s3217_s24, %s2126_s6 }
  0x6e   : > { %s3220_s12 = sld [smem:[#allocation41_spill]]  ;;  %s3221_s13 = sld [smem:[#allocation42_spill]] }
  0x6f   : > { %s3222_s14 = sld [smem:[#allocation43_spill]]  ;;  %s3223_s15 = sld [smem:[#allocation44_spill]] }
  0x70   : > { %s2834_s8 = scalar_lea.vmem %s3135_s16, %s2169_s18  ;;  %s2218_s20 = smul.u32 12, %s927_s29 }
  0x71   : > { %s2846_s24 = scalar_lea.vmem [#allocation8], %s2119_s21  ;;  %s2848_s22 = scalar_lea.vmem [#allocation9], %s2120_s1 }
  0x72   : > { %s2804_s26 = scalar_lea.vmem %s3218_s10, %s2169_s18  ;;  %s2809_s28 = scalar_lea.vmem %s3219_s11, %s2169_s18 }
  0x73   : > { %s2219_s10 = smul.u32 24, %s927_s29  ;;  %s3224_s11 = sld [smem:[#allocation45_spill]] }
  0x74   : > { %s2814_s7 = scalar_lea.vmem %s3220_s12, %s2169_s18  ;;  %s2819_s17 = scalar_lea.vmem %s3221_s13, %s2169_s18 }
  0x75   : > { %s2824_s5 = scalar_lea.vmem %s3222_s14, %s2169_s18  ;;  %s2829_s3 = scalar_lea.vmem %s3223_s15, %s2169_s18 }
  0x76   : > { %s3225_s13 = sld [smem:[#allocation46_spill]]  ;;  %p2145_p10 = scmp.ne.s32.totalorder %s2516_s30, 0 }
  0x77   : > { %s3226_s29 = sld [smem:[#allocation35_spill]] (!%p2145_p10)  ;;  %v2536_v2 = vmov (!%p2145_p10), 0   ;;  %s3230_s27 = sld [smem:[#allocation37_spill]] (!%p2145_p10)  ;;  %v2537_v7 = vmov (!%p2145_p10), 0.0   ;;  %vm2538_vm0 = vmmov (!%p2145_p10), 0   ;;  %vm1065_vm1 = vcmask (!%p2145_p10), 130048  }
  0x78   : > { %987 = sbr.rel (%p2145_p10) target bundleno = 486 (0x1e6), region = 116  ;;  %2342 = vset.pattern.permute.xlu1 (!%p2145_p10), %v2536_v2  ;;  %2341 = vset.pattern.permute.xlu0 (!%p2145_p10), %v2536_v2  ;;  %s3231_s19 = sld [smem:[#allocation36_spill]] (!%p2145_p10)  ;;  %v1112_v47 = vld [vmem:[%s2788_s2] sm:$0xff] (!%p2145_p10) }
  0x79   : > { %s2839_s12 = scalar_lea.vmem %s3224_s11, %s2218_s20  ;;  %s3228_s11 = sld [smem:[#allocation34_spill]] (!%p2145_p10)  ;;  %2189 = vmatprep.subr.bf16.mxu0 (!%p2145_p10), %v2537_v7  ;;  %2191 = vmatprep.mubr.msk.bf16.mxu0 (!%p2145_p10), %vm2538_vm0, %v2537_v7  ;;  %1113 = vst [vmem:[#allocation2 + $0x10] sm:$0xff] (!%p2145_p10), %v1112_v47 }
  0x7a   : > { %s3229_s20 = sld [smem:[#allocation28_spill]] (!%p2145_p10) }
  0x7c   : > { %s2844_s14 = scalar_lea.vmem %s3225_s13, %s2219_s10 }
  0x7d   : > { %s3227_s15 = smov (!%p2145_p10), %s3226_s29  ;;  %v1031_v0 = vld [vmem:[%s3226_s29] sm:$0xff] (!%p2145_p10)  ;;  %v1049_v5 = vld [vmem:[%s3230_s27 + $0x8] sm:$0xff] (!%p2145_p10) }
  0x7e   : > { %1035 = vperm.xlu1 (!%p2145_p10), %2342, %v1031_v0   ;;  %v1032_v3 = vld [vmem:[%s3227_s15 + $0x8] sm:$0xff] (!%p2145_p10)  ;;  %v1048_v6 = vld [vmem:[%s3230_s27] sm:$0xff] (!%p2145_p10) }
  0x7f   : > { %v1017_v1 = vld [vmem:[%s3228_s11] sm:$0xff]  ;;  %v1018_v4 = vld [vmem:[%s3228_s11 + $0x8] sm:$0xff] }
  0x80   : > { %1021 = vperm.xlu0 %2341, %v1017_v1   ;;  %v988_v8 = vld [vmem:[%s3229_s20] sm:$0xff]  ;;  %v989_v9 = vld [vmem:[%s3229_s20 + $0x8] sm:$0xff] }
  0x81   : > { %v990_v10 = vadd.f32 %v989_v9, %v988_v8  ;;  %v998_v11 = vmul.f32 %v988_v8, %v988_v8  ;;  %v999_v12 = vmul.f32 %v989_v9, %v989_v9  ;;  %v2343_v46 = vld [vmem:[%s3231_s19] sm:$0xff]  }
  0x82   : > { %1040 = vperm.xlu1 %2342, %v1032_v3  }
  0x83   : > { %v991_v13 = vrot.slane %v990_v10, 4  ;;  %v1000_v14 = vadd.f32 %v999_v12, %v998_v11 }
  0x84   : > { %1026 = vperm.xlu0 %2341, %v1018_v4  }
  0x85   : > { %v992_v15 = vadd.f32 %v991_v13, %v990_v10  ;;  %v1001_v16 = vrot.slane %v1000_v14, 4 }
  0x86   : > { %1057 = vperm.xlu1 %2342, %v1049_v5  }
  0x87   : > { %v993_v17 = vrot.slane %v992_v15, 2  ;;  %v1002_v18 = vadd.f32 %v1001_v16, %v1000_v14 }
  0x88   : > { %1052 = vperm.xlu0 %2341, %v1048_v6  }
  0x89   : > { %v994_v19 = vadd.f32 %v993_v17, %v992_v15  ;;  %v1003_v20 = vrot.slane %v1002_v18, 2 }
  0x8b   : > { %v995_v21 = vrot.slane %v994_v19, 1  ;;  %v1004_v22 = vadd.f32 %v1003_v20, %v1002_v18 }
  0x8d   : > { %v996_v23 = vadd.f32 %v995_v21, %v994_v19  ;;  %v1005_v24 = vrot.slane %v1004_v22, 1 }
  0x8f   : > { %v997_v25 = vmul.f32 0.0625, %v996_v23  ;;  %v1006_v26 = vadd.f32 %v1005_v24, %v1004_v22 }
  0x91   : > { %v1007_v27 = vmul.f32 0.0625, %v1006_v26  ;;  %v1008_v28 = vmul.f32 %v997_v25, %v997_v25  ;;  %v1011_v32 = vsub.f32 %v988_v8, %v997_v25  ;;  %v1012_v34 = vsub.f32 %v989_v9, %v997_v25 }
  0x93   : > { %v1009_v29 = vsub.f32 %v1007_v27, %v1008_v28 }
  0x95   : > { %v1010_v30 = vmax.f32 %v1009_v29, 0.0 }
  0x97   : > { %v1013_v31 = vadd.f32 1e-05, %v1010_v30 }
  0x99   : > { %2344 = vrsqrt.f32 %v1013_v31 }
  0xa3   : > { %v2345_v33 = vpop.eup %2344 }
  0xa4   : > { %v1015_v35 = vmul.f32 %v2345_v33, %v1011_v32  ;;  %v1016_v38 = vmul.f32 %v2345_v33, %v1012_v34 }
  0xfd   : > { %v1036_v36 = vpop.permute.xlu1 %1035 }
  0xff   : > { %v1022_v37 = vpop.permute.xlu0 %1021 }
 0x100   : > { %v1029_v39 = vmul.f32 %v1022_v37, %v1015_v35 }
 0x101   : > { %v1041_v42 = vpop.permute.xlu1 %1040 }
 0x102   : > { %v1043_v43 = vadd.f32 %v1036_v36, %v1029_v39 }
 0x103   : > { %v1027_v40 = vpop.permute.xlu0 %1026 }
 0x104   : > { %v1030_v41 = vmul.f32 %v1027_v40, %v1016_v38 }
 0x105   : > { %v1058_v52 = vpop.permute.xlu1 %1057 }
 0x106   : > { %v1044_v44 = vadd.f32 %v1041_v42, %v1030_v41 }
 0x107   : > { %v1053_v48 = vpop.permute.xlu0 %1052 }
 0x108   : > { %v1047_v45 = vpack.c.bf16 %v1044_v44, %v1043_v43 }
 0x10a   : > { %2190 = vmatpush3.bf16.msra.mxu0 %v1047_v45 }
 0x10d   : > { %2192 = vmatmul.mubr.msk.bf16.vlgmr.msra.gmra.mrb[0].mxu0 %vm1065_vm1, %v2343_v46 }
 0x1e0   : > { %v1103_v49 = vpop.f32.mrb[0].mxu0 }
 0x1e1   : > { %v1104_v50 = vadd.f32 %v1103_v49, %v1053_v48  ;;  %v2193_v51 = vpop.f32.mrb[1].mxu0 }
 0x1e2   : > { %v1106_v53 = vpop.f32.mrb[2].mxu0 }
 0x1e3   : > { %1110 = vst [vmem:[#allocation2] sm:$0xff] %v1104_v50  ;;  %v1107_v54 = vadd.f32 %v1106_v53, %v1058_v52  ;;  %v2194_v55 = vpop.f32.mrb[3].mxu0 }
 0x1e5   : > { %1111 = vst [vmem:[#allocation2 + $0x8] sm:$0xff] %v1107_v54 }
 0x1e6 PF: > { %vm1157_vm2 = vcmask 195584   ;;  %v2358_v61 = vld [vmem:[%s2794_s4] sm:$0xff]   ;;  %v2539_v62 = vmov 0   ;;  %vm1164_vm3 = vcmask 1043456   ;;  %v1125_v0 = vld [vmem:[%s2804_s26 + $0x10] sm:$0xff]  ;;  %v1124_v2 = vld [vmem:[%s2804_s26 + $0x8] sm:$0xff] }
 0x1e7   : > { %v2879_v58 = vld [vmem:[#allocation2 + $0x10] sm:$0xff]  ;;  %2346 = vset.pattern.permute.xlu0 %v2539_v62  ;;  %2347 = vset.pattern.permute.xlu1 %v2539_v62  ;;  %v1123_v63 = vld [vmem:[%s2804_s26] sm:$0xff]  ;;  %v2359_v4 = vld [vmem:[%s2794_s4 + $0x8] sm:$0xff]   ;;  %s2900_s2 = sshll.u32 %s2516_s30, 7  ;;  %s2542_s10 = smov 0.0   ;;  %vm1656_vm14 = vcmask 261120  }
 0x1e8   : > { %v1122_v60 = vpack.c.bf16 %v2879_v58, %v2879_v58  ;;  %2199 = vmatprep.mubr.msk.bf16.mxu0 %vm1157_vm2, %v2358_v61  ;;  %1129 = vperm.xlu0 %2346, %v1123_v63   ;;  %v1217_v3 = vld [vmem:[%s2799_s0] sm:$0xff]  ;;  %v1218_v5 = vld [vmem:[%s2799_s0 + $0x8] sm:$0xff]  ;;  %v1126_v6 = vld [vmem:[%s2804_s26 + $0x18] sm:$0xff]  ;;  %s1246_s4 = sld [smem:[#allocation6 + %s2900_s2]]  ;;  %v2540_v61 = vmov 1   ;;  %p2157_p13 = scmp.ne.s32.totalorder %s2516_s30, 3 }
 0x1e9   : > { %1139 = vperm.xlu1 %2347, %v1125_v0   ;;  %v1219_v7 = vld [vmem:[%s2799_s0 + $0x10] sm:$0xff]  ;;  %v1220_v8 = vld [vmem:[%s2799_s0 + $0x18] sm:$0xff]  ;;  %v1308_v48 = vld [vmem:[%s2809_s28 + $0x8] sm:$0xff]  ;;  %v2541_v0 = vmov 2   ;;  %s2944_s1 = sld [smem:[#allocation3 + %s2900_s2]]  ;;  %vm2544_vm15 = vmmov (!%p2157_p13), 0  }
 0x1ea   : > { %v2875_v56 = vld [vmem:[#allocation2] sm:$0xff]  ;;  %v1166_v1 = vsel %vm1164_vm3, %v1122_v60, 0  ;;  %v1309_v51 = vld [vmem:[%s2809_s28 + $0x10] sm:$0xff]  ;;  %v1310_v52 = vld [vmem:[%s2809_s28 + $0x18] sm:$0xff]  ;;  %vm1743_vm0 = vcmask (!%p2157_p13), 130048  }
 0x1eb   : > { %v1307_v49 = vld [vmem:[%s2809_s28] sm:$0xff]  ;;  %v1336_v53 = vld [vmem:[%s2814_s7 + $0x8] sm:$0xff]  ;;  %v1338_v54 = vld [vmem:[%s2814_s7 + $0x18] sm:$0xff] }
 0x1ec   : > { %v2877_v57 = vld [vmem:[#allocation2 + $0x8] sm:$0xff]  ;;  %1134 = vperm.xlu0 %2346, %v1124_v2   ;;  %v1335_v50 = vld [vmem:[%s2814_s7] sm:$0xff]  ;;  %v1337_v55 = vld [vmem:[%s2814_s7 + $0x10] sm:$0xff] }
 0x1ed   : > { %v1121_v59 = vpack.c.bf16 %v2877_v57, %v2875_v56  ;;  %1223 = vperm.xlu1 %2347, %v1217_v3   ;;  %v1405_v63 = vld [vmem:[%s2819_s17 + $0x10] sm:$0xff]  ;;  %v1479_v2 = vld [vmem:[%s2824_s5] sm:$0xff]  ;;  %v1480_v3 = vld [vmem:[%s2824_s5 + $0x8] sm:$0xff] }
 0x1ee   : > { %v1251_v22 = vstv %s1246_s4 }
 0x1ef   : > { %2195 = vmatprep.subr.bf16.mxu0 %v1121_v59  ;;  %s1368_s6 = sand.u32 127, %s2944_s1   ;;  %s1384_s9 = ssub.s32 128, %s2944_s1 }
 0x1f0   : > { %2196 = vmatpush3.bf16.msra.mxu0 %v1121_v59  ;;  %1228 = vperm.xlu0 %2346, %v1218_v5   ;;  %v1404_v59 = vld [vmem:[%s2819_s17 + $0x8] sm:$0xff]  ;;  %s1387_s18 = sand.u32 127, %s1384_s9  }
 0x1f1   : > { %2217 = vmatprep.subr.msk.bf16.mxu0 %vm1164_vm3, %v1122_v60  ;;  %1144 = vperm.xlu1 %2347, %v1126_v6   ;;  %v1403_v60 = vld [vmem:[%s2819_s17] sm:$0xff] }
 0x1f4   : > { %2198 = vmatpush3.bf16.msra.mxu0 %v1166_v1  ;;  %1233 = vperm.xlu0 %2346, %v1219_v7   ;;  %v1406_v1 = vld [vmem:[%s2819_s17 + $0x18] sm:$0xff] }
 0x1f5   : > { %1238 = vperm.xlu1 %2347, %v1220_v8  }
 0x1f7   : > { %2200 = vmatmul.mubr.msk.bf16.vlgmr.msra.gmra.mrb[0].mxu0 %vm1157_vm2, %v2359_v4  ;;  %v1481_v4 = vld [vmem:[%s2824_s5 + $0x10] sm:$0xff] }
 0x267   : > { %v1130_v9 = vpop.permute.xlu0 %1129 }
 0x268   : > { %v1140_v10 = vpop.permute.xlu1 %1139 }
 0x26b   : > { %v1135_v11 = vpop.permute.xlu0 %1134 }
 0x26c   : > { %v1224_v12 = vpop.permute.xlu1 %1223 }
 0x26f   : > { %v1229_v13 = vpop.permute.xlu0 %1228 }
 0x270   : > { %v1145_v14 = vpop.permute.xlu1 %1144 }
 0x273   : > { %v1234_v18 = vpop.permute.xlu0 %1233 }
 0x274   : > { %v1239_v25 = vpop.permute.xlu1 %1238 }
 0x2ca   : > { %v2201_v15 = vpop.f32.mrb[0].mxu0 }
 0x2cb   : > { %v1211_v16 = vadd.f32 %v2201_v15, %v1140_v10  ;;  %v1202_v17 = vpop.f32.mrb[1].mxu0 }
 0x2cc   : > { %v1203_v19 = vadd.f32 %v1202_v17, %v1130_v9  ;;  %v2202_v20 = vpop.f32.mrb[2].mxu0 }
 0x2cd   : > { %v1243_v21 = vadd.f32 %v1234_v18, %v1211_v16  ;;  %v1214_v23 = vadd.f32 %v2202_v20, %v1145_v14  ;;  %v1205_v24 = vpop.f32.mrb[3].mxu0 }
 0x2ce   : > { %v1241_v26 = vadd.f32 %v1224_v12, %v1203_v19  ;;  %v1206_v27 = vadd.f32 %v1205_v24, %v1135_v11 }
 0x2cf   : > { %v1244_v28 = vadd.f32 %v1239_v25, %v1214_v23  ;;  %v1254_v29 = vmul.f32 %v1251_v22, %v1243_v21  ;;  %vm1249_vm5 = vcmp.gt.f32.partialorder %v1243_v21, 0.0 }
 0x2d0   : > { %vm1247_vm4 = vcmp.gt.f32.partialorder %v1241_v26, 0.0  ;;  %v1252_v30 = vmul.f32 %v1251_v22, %v1241_v26  ;;  %v1242_v31 = vadd.f32 %v1229_v13, %v1206_v27 }
 0x2d1   : > { %v1255_v33 = vmul.f32 %v1251_v22, %v1244_v28  ;;  %vm1250_vm7 = vcmp.gt.f32.partialorder %v1244_v28, 0.0  ;;  %v2907_v36 = vsel %vm1249_vm5, %v1243_v21, %v1254_v29 }
 0x2d2   : > { %v2903_v32 = vsel %vm1247_vm4, %v1241_v26, %v1252_v30  ;;  %vm1248_vm6 = vcmp.gt.f32.partialorder %v1242_v31, 0.0  ;;  %v1253_v34 = vmul.f32 %v1251_v22, %v1242_v31  ;;  %v1275_v42 = vmul.f32 %v2907_v36, %v2907_v36 }
 0x2d3   : > { %v1273_v38 = vmul.f32 %v2903_v32, %v2903_v32  ;;  %v2915_v40 = vsel %vm1250_vm7, %v1244_v28, %v1255_v33 }
 0x2d4   : > { %v2905_v35 = vsel %vm1248_vm6, %v1242_v31, %v1253_v34  ;;  %v1276_v45 = vmul.f32 %v2915_v40, %v2915_v40 }
 0x2d5   : > { %v1260_v37 = vadd.f32 %v2905_v35, %v2903_v32  ;;  %v1274_v39 = vmul.f32 %v2905_v35, %v2905_v35 }
 0x2d7   : > { %v1261_v41 = vadd.f32 %v1260_v37, %v2907_v36  ;;  %v1277_v43 = vadd.f32 %v1274_v39, %v1273_v38 }
 0x2d9   : > { %v1262_v44 = vadd.f32 %v1261_v41, %v2915_v40  ;;  %v1278_v46 = vadd.f32 %v1277_v43, %v1275_v42 }
 0x2db   : > { %1263 = vadd.xlane.f32.xlu0 %v1262_v44  ;;  %v1279_v47 = vadd.f32 %v1278_v46, %v1276_v45 }
 0x2dd   : > { %1280 = vadd.xlane.f32.xlu1 %v1279_v47  ;;  %v1482_v47 = vld [vmem:[%s2824_s5 + $0x18] sm:$0xff]  ;;  %s1507_s5 = sadd.s32 1, %s2900_s2 }
 0x2de   : > { %s1508_s29 = sld [smem:[#allocation6 + %s1507_s5]] }
 0x2ee   : > { %1318 = vperm.xlu1 %2347, %v1308_v48  }
 0x2f1   : > { %1313 = vperm.xlu0 %2346, %v1307_v49  }
 0x2f2   : > { %1341 = vperm.xlu1 %2347, %v1335_v50  }
 0x2f5   : > { %1323 = vperm.xlu0 %2346, %v1309_v51  }
 0x2f6   : > { %1328 = vperm.xlu1 %2347, %v1310_v52  }
 0x2f9   : > { %1346 = vperm.xlu0 %2346, %v1336_v53  }
 0x2fa   : > { %1356 = vperm.xlu1 %2347, %v1338_v54  }
 0x2fd   : > { %1351 = vperm.xlu0 %2346, %v1337_v55  }
 0x2fe   : > { %1414 = vperm.xlu1 %2347, %v1404_v59  }
 0x301   : > { %2348 = vset.pattern.permute.xlu0 %v2540_v61 }
 0x302   : > { %2349 = vset.pattern.permute.xlu1 %v2540_v61  ;;  %1432 = vperm.xlu0 %2348, %v1403_v60  }
 0x303   : > { %1436 = vperm.xlu1 %2349, %v1404_v59  }
 0x306   : > { %1440 = vperm.xlu0 %2348, %v1405_v63  }
 0x307   : > { %2350 = vset.pattern.permute.xlu1 %v2539_v62 }
 0x308   : > { %1419 = vperm.xlu1 %2350, %v1405_v63  }
 0x30a   : > { %2352 = vset.pattern.permute.xlu0 %v2541_v0 }
 0x30b   : > { %1460 = vperm.xlu0 %2352, %v1404_v59  }
 0x30c   : > { %2351 = vset.pattern.permute.xlu1 %v2541_v0 }
 0x30d   : > { %1456 = vperm.xlu1 %2351, %v1403_v60  }
 0x30f   : > { %1464 = vperm.xlu0 %2352, %v1405_v63  }
 0x311   : > { %2353 = vset.pattern.permute.xlu1 %v2539_v62 }
 0x312   : > { %1424 = vperm.xlu1 %2353, %v1406_v1  }
 0x313   : > { %2355 = vset.pattern.permute.xlu0 %v2539_v62 }
 0x314   : > { %1409 = vperm.xlu0 %2355, %v1403_v60  }
 0x316   : > { %2354 = vset.pattern.permute.xlu1 %v2540_v61 }
 0x317   : > { %1444 = vperm.xlu1 %2354, %v1406_v1  }
 0x318   : > { %1485 = vperm.xlu0 %2355, %v1479_v2  }
 0x31b   : > { %2356 = vset.pattern.permute.xlu1 %v2541_v0  ;;  %v1364_v0 = vlaneseq }
 0x31c   : > { %1468 = vperm.xlu1 %2356, %v1406_v1   ;;  %1495 = vperm.xlu0 %2355, %v1481_v4   ;;  %v1366_v4 = vstv %s2944_s1 }
 0x320   : > { %2357 = vset.pattern.permute.xlu1 %v2539_v62 }
 0x321   : > { %1490 = vperm.xlu1 %2357, %v1480_v3   ;;  %v1365_v3 = vand.u32 127, %v1364_v0 }
 0x323   : > { %vm2956_vm8 = vcmp.ge.s32.totalorder %v1365_v3, %v1366_v4 }
 0x368   : > { %v1264_v5 = vpop.xlane.xlu0 %1263 }
 0x369   : > { %v1265_v6 = vrot.slane %v1264_v5, 4 }
 0x36a   : > { %v1281_v7 = vpop.xlane.xlu1 %1280 }
 0x36b   : > { %v1266_v8 = vadd.f32 %v1265_v6, %v1264_v5  ;;  %v1282_v9 = vrot.slane %v1281_v7, 4 }
 0x36d   : > { %v1267_v10 = vrot.slane %v1266_v8, 2  ;;  %v1283_v11 = vadd.f32 %v1282_v9, %v1281_v7 }
 0x36e   : > { %v1319_v23 = vpop.permute.xlu1 %1318 }
 0x36f   : > { %v1284_v12 = vrot.slane %v1283_v11, 2  ;;  %v1268_v13 = vadd.f32 %v1267_v10, %v1266_v8  ;;  %v1385_v10 = vstv %s1384_s9 }
 0x370   : > { %v1314_v20 = vpop.permute.xlu0 %1313  ;;  %vm1386_vm9 = vcmp.lt.s32.totalorder %v1365_v3, %v1385_v10  ;;  %v1598_v10 = vld [vmem:[%s2834_s8 + $0x8] sm:$0xff] }
 0x371   : > { %v1269_v14 = vrot.slane %v1268_v13, 1  ;;  %v1285_v15 = vadd.f32 %v1284_v12, %v1283_v11 }
 0x372   : > { %v1342_v37 = vpop.permute.xlu1 %1341 }
 0x373   : > { %v1270_v16 = vadd.f32 %v1269_v14, %v1268_v13  ;;  %v1286_v17 = vrot.slane %v1285_v15, 1 }
 0x374   : > { %v1324_v21 = vpop.permute.xlu0 %1323 }
 0x375   : > { %2220 = vpush %v1270_v16  ;;  %v1287_v62 = vadd.f32 %v1286_v17, %v1285_v15 }
 0x376   : > { %v1329_v43 = vpop.permute.xlu1 %1328 }
 0x377   : > { %2222 = vpush %v1287_v62 }
 0x378   : > { %v1347_v31 = vpop.permute.xlu0 %1346 }
 0x37a   : > { %v1357_v45 = vpop.permute.xlu1 %1356 }
 0x3a6   : > { %s2221_s0 = spop %2220 }
 0x3a7   : > { %s1272_s26 = smul.f32 0.00024414063, %s2221_s0 }
 0x3a8   : > { %s2223_s28 = spop %2222 }
 0x3a9   : > { %s1290_s7 = smul.f32 %s1272_s26, %s1272_s26  ;;  %v1293_v22 = vstv %s1272_s26 }
 0x3aa   : > { %s1289_s17 = smul.f32 0.00024414063, %s2223_s28  ;;  %v1294_v24 = vsub.f32 %v2903_v32, %v1293_v22  ;;  %v1295_v25 = vsub.f32 %v2905_v35, %v1293_v22  ;;  %v1296_v26 = vsub.f32 %v2907_v36, %v1293_v22  ;;  %v1297_v32 = vsub.f32 %v2915_v40, %v1293_v22  ;;  %v1352_v35 = vpop.permute.xlu0 %1351  ;;  %v1415_v40 = vpop.permute.xlu1 %1414 }
 0x3ac   : > { %s1291_s20 = ssub.f32 %s1289_s17, %s1290_s7  ;;  %s3234_s7 = sld [smem:[#allocation48_spill]] (!%p2157_p13) }
 0x3ae   : > { %s1292_s13 = smax.f32 %s2542_s10, %s1291_s20  ;;  %v1437_v48 = vpop.permute.xlu1 %1436  ;;  %v1433_v49 = vpop.permute.xlu0 %1432 }
 0x3af   : > { %s1298_s21 = sadd.f32 1e-05, %s1292_s13  ;;  %s3236_s13 = sld [smem:[#allocation28_spill]] (!%p2157_p13) }
 0x3b1   : > { %v1299_v18 = vstv %s1298_s21 }
 0x3b2   : > { %2362 = vrsqrt.f32 %v1299_v18  ;;  %v1420_v50 = vpop.permute.xlu1 %1419  ;;  %v1441_v51 = vpop.permute.xlu0 %1440 }
 0x3b6   : > { %v1461_v52 = vpop.permute.xlu0 %1460  ;;  %v1457_v53 = vpop.permute.xlu1 %1456 }
 0x3ba   : > { %v1465_v54 = vpop.permute.xlu0 %1464  ;;  %v1425_v55 = vpop.permute.xlu1 %1424 }
 0x3bc   : > { %v2363_v19 = vpop.eup %2362 }
 0x3bd   : > { %2224 = vpush %v2363_v19 }
 0x3be   : > { %v1410_v59 = vpop.permute.xlu0 %1409  ;;  %v1445_v60 = vpop.permute.xlu1 %1444 }
 0x3c2   : > { %v1469_v61 = vpop.permute.xlu1 %1468  ;;  %v1486_v63 = vpop.permute.xlu0 %1485 }
 0x3c6   : > { %v1491_v1 = vpop.permute.xlu1 %1490  ;;  %v1496_v2 = vpop.permute.xlu0 %1495 }
 0x3ee   : > { %s2225_s25 = spop %2224 }
 0x3ef   : > { %v1302_v27 = vstv %s2225_s25 }
 0x3f0   : > { %v1303_v28 = vmul.f32 %v1302_v27, %v1294_v24  ;;  %v1304_v29 = vmul.f32 %v1302_v27, %v1295_v25  ;;  %v1305_v30 = vmul.f32 %v1302_v27, %v1296_v26  ;;  %v1306_v36 = vmul.f32 %v1302_v27, %v1297_v32 }
 0x3f2   : > { %v1331_v33 = vmul.f32 %v1314_v20, %v1303_v28  ;;  %v1332_v34 = vmul.f32 %v1319_v23, %v1304_v29  ;;  %v1333_v38 = vmul.f32 %v1324_v21, %v1305_v30  ;;  %v1334_v44 = vmul.f32 %v1329_v43, %v1306_v36 }
 0x3f3   : > { %v1513_v36 = vstv %s1508_s29 }
 0x3f4   : > { %v1359_v39 = vadd.f32 %v1342_v37, %v1331_v33  ;;  %v1360_v41 = vadd.f32 %v1347_v31, %v1332_v34  ;;  %v1361_v42 = vadd.f32 %v1352_v35, %v1333_v38  ;;  %v1362_v46 = vadd.f32 %v1357_v45, %v1334_v44 }
 0x3f6   : > { %1370 = vrot.lane.b32.xlu1 %v1359_v39, %s1368_s6  ;;  %1372 = vrot.lane.b32.xlu0 %v1360_v41, %s1368_s6  ;;  %v1447_v11 = vmul.f32 %v1433_v49, %v1359_v39  ;;  %v1448_v13 = vmul.f32 %v1437_v48, %v1360_v41  ;;  %v1449_v19 = vmul.f32 %v1441_v51, %v1361_v42 }
 0x3f7   : > { %v1450_v33 = vmul.f32 %v1445_v60, %v1362_v46 }
 0x3fa   : > { %1389 = vrot.lane.b32.xlu0 %v1359_v39, %s1387_s18  ;;  %1374 = vrot.lane.b32.xlu1 %v1361_v42, %s1368_s6 }
 0x3fe   : > { %1393 = vrot.lane.b32.xlu0 %v1361_v42, %s1387_s18  ;;  %1391 = vrot.lane.b32.xlu1 %v1360_v41, %s1387_s18 }
 0x402   : > { %1395 = vrot.lane.b32.xlu0 %v1362_v46, %s1387_s18  ;;  %1376 = vrot.lane.b32.xlu1 %v1362_v46, %s1368_s6 }
 0x406   : > { %1500 = vperm.xlu1 %2357, %v1482_v47  }
 0x468   : > { %v1371_v6 = vpop.permute.xlu1 %1370  ;;  %v1373_v7 = vpop.permute.xlu0 %1372 }
 0x469   : > { %v1380_v8 = vsel %vm2956_vm8, %v1371_v6, 0.0  ;;  %v1381_v9 = vsel %vm2956_vm8, %v1373_v7, 0.0  ;;  %v1570_v6 = vld [vmem:[%s2829_s3 + $0x8] sm:$0xff]  ;;  %v1597_v7 = vld [vmem:[%s2834_s8] sm:$0xff] }
 0x46a   : > { %v1427_v12 = vmul.f32 %v1410_v59, %v1380_v8  ;;  %v1428_v14 = vmul.f32 %v1415_v40, %v1381_v9  ;;  %v1569_v8 = vld [vmem:[%s2829_s3] sm:$0xff]  ;;  %v1571_v9 = vld [vmem:[%s2829_s3 + $0x10] sm:$0xff] }
 0x46c   : > { %v1451_v15 = vadd.f32 %v1447_v11, %v1427_v12  ;;  %v1452_v16 = vadd.f32 %v1448_v13, %v1428_v14  ;;  %v1375_v17 = vpop.permute.xlu1 %1374  ;;  %v1390_v62 = vpop.permute.xlu0 %1389  ;;  %v1599_v11 = vld [vmem:[%s2834_s8 + $0x10] sm:$0xff]  ;;  %v1572_v12 = vld [vmem:[%s2829_s3 + $0x18] sm:$0xff]  ;;  %v1630_v13 = vld [vmem:[%s2844_s14] sm:$0xff] }
 0x46d   : > { %v1382_v18 = vsel %vm2956_vm8, %v1375_v17, 0.0  ;;  %v1399_v21 = vsel %vm1386_vm9, %v1390_v62, 0.0  ;;  %v1600_v14 = vld [vmem:[%s2834_s8 + $0x18] sm:$0xff] }
 0x46e   : > { %v1429_v20 = vmul.f32 %v1420_v50, %v1382_v18  ;;  %v1471_v26 = vmul.f32 %v1457_v53, %v1399_v21 }
 0x470   : > { %v1453_v22 = vadd.f32 %v1449_v19, %v1429_v20  ;;  %v1392_v23 = vpop.permute.xlu1 %1391  ;;  %v1394_v24 = vpop.permute.xlu0 %1393  ;;  %v1475_v34 = vadd.f32 %v1471_v26, %v1451_v15  ;;  %v1632_v15 = vld [vmem:[%s2844_s14 + $0x10] sm:$0xff] }
 0x471   : > { %v1400_v25 = vsel %vm1386_vm9, %v1392_v23, 0.0  ;;  %v1401_v28 = vsel %vm1386_vm9, %v1394_v24, 0.0 }
 0x472   : > { %v1472_v27 = vmul.f32 %v1461_v52, %v1400_v25  ;;  %v1473_v37 = vmul.f32 %v1465_v54, %v1401_v28  ;;  %v1503_v32 = vadd.f32 %v1486_v63, %v1475_v34 }
 0x474   : > { %v1476_v29 = vadd.f32 %v1472_v27, %v1452_v16  ;;  %v1377_v30 = vpop.permute.xlu1 %1376  ;;  %v1477_v35 = vadd.f32 %v1473_v37, %v1453_v22  ;;  %v1396_v42 = vpop.permute.xlu0 %1395  ;;  %v1514_v45 = vmul.f32 %v1513_v36, %v1503_v32  ;;  %vm1509_vm11 = vcmp.gt.f32.partialorder %v1503_v32, 0.0  ;;  %v1631_v16 = vld [vmem:[%s2844_s14 + $0x8] sm:$0xff] }
 0x475   : > { %v1383_v31 = vsel %vm2956_vm8, %v1377_v30, 0.0  ;;  %v1402_v47 = vsel %vm1386_vm9, %v1396_v42, 0.0  ;;  %v2360_v30 = vld [vmem:[%s2839_s12] sm:$0xff]  }
 0x476   : > { %v1430_v38 = vmul.f32 %v1425_v55, %v1383_v31  ;;  %v1504_v39 = vadd.f32 %v1491_v1, %v1476_v29  ;;  %v1505_v44 = vadd.f32 %v1496_v2, %v1477_v35  ;;  %v1474_v48 = vmul.f32 %v1469_v61, %v1402_v47  ;;  %2207 = vmatprep.mubr.msk.bf16.mxu1 %vm1656_vm14, %v2360_v30  ;;  %v1791_v30 = vld [vmem:[%s3236_s13 + $0x8] sm:$0xff] (!%p2157_p13) }
 0x477   : > { %v2977_v49 = vsel %vm1509_vm11, %v1503_v32, %v1514_v45 }
 0x478   : > { %v1454_v41 = vadd.f32 %v1450_v33, %v1430_v38  ;;  %v1515_v43 = vmul.f32 %v1513_v36, %v1504_v39  ;;  %vm1510_vm10 = vcmp.gt.f32.partialorder %v1504_v39, 0.0  ;;  %v1516_v46 = vmul.f32 %v1513_v36, %v1505_v44 }
 0x479   : > { %vm1511_vm12 = vcmp.gt.f32.partialorder %v1505_v44, 0.0  ;;  %v1535_v54 = vmul.f32 %v2977_v49, %v2977_v49 }
 0x47a   : > { %v2975_v40 = vsel %vm1510_vm10, %v1504_v39, %v1515_v43  ;;  %v1478_v51 = vadd.f32 %v1474_v48, %v1454_v41  ;;  %v2985_v59 = vsel %vm1511_vm12, %v1505_v44, %v1516_v46 }
 0x47b   : > { %v1536_v50 = vmul.f32 %v2975_v40, %v2975_v40  ;;  %v1522_v53 = vadd.f32 %v2975_v40, %v2977_v49  ;;  %v1537_v0 = vmul.f32 %v2985_v59, %v2985_v59 }
 0x47d   : > { %v1539_v60 = vadd.f32 %v1536_v50, %v1535_v54  ;;  %v1523_v63 = vadd.f32 %v1522_v53, %v2985_v59 }
 0x47f   : > { %v1540_v4 = vadd.f32 %v1539_v60, %v1537_v0 }
 0x485   : > { %v1501_v52 = vpop.permute.xlu1 %1500 }
 0x486   : > { %v1506_v55 = vadd.f32 %v1501_v52, %v1478_v51 }
 0x488   : > { %vm1512_vm13 = vcmp.gt.f32.partialorder %v1506_v55, 0.0  ;;  %v1517_v61 = vmul.f32 %v1513_v36, %v1506_v55 }
 0x48a   : > { %v2990_v1 = vsel %vm1512_vm13, %v1506_v55, %v1517_v61 }
 0x48b   : > { %v1524_v2 = vadd.f32 %v1523_v63, %v2990_v1  ;;  %v1538_v3 = vmul.f32 %v2990_v1, %v2990_v1 }
 0x48d   : > { %1525 = vadd.xlane.f32.xlu1 %v1524_v2  ;;  %v1541_v5 = vadd.f32 %v1540_v4, %v1538_v3 }
 0x48f   : > { %1542 = vadd.xlane.f32.xlu0 %v1541_v5 }
 0x49e   : > { %1580 = vperm.xlu1 %2357, %v1570_v6  }
 0x4a2   : > { %1603 = vperm.xlu1 %2357, %v1597_v7  }
 0x4a5   : > { %1575 = vperm.xlu0 %2355, %v1569_v8  }
 0x4a6   : > { %1585 = vperm.xlu1 %2357, %v1571_v9  }
 0x4a9   : > { %1608 = vperm.xlu0 %2355, %v1598_v10  }
 0x4aa   : > { %1613 = vperm.xlu1 %2357, %v1599_v11  }
 0x4ad   : > { %1590 = vperm.xlu0 %2355, %v1572_v12  }
 0x4ae   : > { %1635 = vperm.xlu1 %2357, %v1630_v13  }
 0x4b1   : > { %1618 = vperm.xlu0 %2355, %v1600_v14  }
 0x4b2   : > { %1645 = vperm.xlu1 %2357, %v1632_v15  }
 0x4b5   : > { %1640 = vperm.xlu0 %2355, %v1631_v16  }
 0x51a   : > { %v1526_v17 = vpop.xlane.xlu1 %1525 }
 0x51b   : > { %v1527_v62 = vrot.slane %v1526_v17, 4 }
 0x51c   : > { %v1543_v18 = vpop.xlane.xlu0 %1542 }
 0x51d   : > { %v1528_v19 = vadd.f32 %v1527_v62, %v1526_v17  ;;  %v1544_v20 = vrot.slane %v1543_v18, 4  ;;  %v2543_v17 = vmov (!%p2157_p13), 0.0  }
 0x51e   : > { %v1581_v34 = vpop.permute.xlu1 %1580  ;;  %2211 = vmatprep.subr.bf16.mxu0 (!%p2157_p13), %v2543_v17  ;;  %2213 = vmatprep.mubr.msk.bf16.mxu0 (!%p2157_p13), %vm2544_vm15, %v2543_v17 }
 0x51f   : > { %v1529_v21 = vrot.slane %v1528_v19, 2  ;;  %v1545_v22 = vadd.f32 %v1544_v20, %v1543_v18  ;;  %v1727_v18 = vld [vmem:[%s3234_s7 + $0x8] sm:$0xff] (!%p2157_p13) }
 0x521   : > { %v1546_v23 = vrot.slane %v1545_v22, 2  ;;  %v1530_v24 = vadd.f32 %v1529_v21, %v1528_v19 }
 0x522   : > { %v1604_v38 = vpop.permute.xlu1 %1603 }
 0x523   : > { %v1531_v25 = vrot.slane %v1530_v24, 1  ;;  %v1547_v26 = vadd.f32 %v1546_v23, %v1545_v22 }
 0x524   : > { %v1576_v37 = vpop.permute.xlu0 %1575 }
 0x525   : > { %v1532_v27 = vadd.f32 %v1531_v25, %v1530_v24  ;;  %v1548_v28 = vrot.slane %v1547_v26, 1  ;;  %v1790_v25 = vld [vmem:[%s3236_s13] sm:$0xff] (!%p2157_p13) }
 0x526   : > { %v1586_v32 = vpop.permute.xlu1 %1585 }
 0x527   : > { %2226 = vpush %v1532_v27  ;;  %v1549_v29 = vadd.f32 %v1548_v28, %v1547_v26 }
 0x528   : > { %v1609_v39 = vpop.permute.xlu0 %1608 }
 0x529   : > { %2228 = vpush %v1549_v29 }
 0x52a   : > { %v1614_v55 = vpop.permute.xlu1 %1613 }
 0x52c   : > { %v1591_v35 = vpop.permute.xlu0 %1590 }
 0x52e   : > { %v1636_v2 = vpop.permute.xlu1 %1635 }
 0x530   : > { %v1619_v60 = vpop.permute.xlu0 %1618 }
 0x532   : > { %v1646_v3 = vpop.permute.xlu1 %1645 }
 0x534   : > { %v1641_v9 = vpop.permute.xlu0 %1640 }
 0x558   : > { %s2227_s14 = spop %2226 }
 0x559   : > { %s1534_s3 = smul.f32 0.00024414063, %s2227_s14 }
 0x55a   : > { %s2229_s8 = spop %2228 }
 0x55b   : > { %s1552_s23 = smul.f32 %s1534_s3, %s1534_s3  ;;  %v1555_v41 = vstv %s1534_s3 }
 0x55c   : > { %s1551_s19 = smul.f32 0.00024414063, %s2229_s8  ;;  %v1556_v36 = vsub.f32 %v2977_v49, %v1555_v41  ;;  %v1557_v42 = vsub.f32 %v2975_v40, %v1555_v41  ;;  %v1558_v43 = vsub.f32 %v2985_v59, %v1555_v41  ;;  %v1559_v44 = vsub.f32 %v2990_v1, %v1555_v41  ;;  %v2361_v1 = vld [vmem:[%s2839_s12 + $0x8] ss:$0 sps:$4 sm:$0xff]  }
 0x55e   : > { %s1553_s2 = ssub.f32 %s1551_s19, %s1552_s23 }
 0x560   : > { %s1554_s4 = smax.f32 %s2542_s10, %s1553_s2  ;;  %s3235_s10 = sld [smem:[#allocation47_spill]] (!%p2157_p13) }
 0x561   : > { %s1560_s0 = sadd.f32 1e-05, %s1554_s4 }
 0x563   : > { %v1561_v31 = vstv %s1560_s0 }
 0x564   : > { %2364 = vrsqrt.f32 %v1561_v31 }
 0x56e   : > { %v2365_v33 = vpop.eup %2364 }
 0x56f   : > { %2230 = vpush %v2365_v33 }
 0x5a0   : > { %s2231_s26 = spop %2230 }
 0x5a1   : > { %v1564_v45 = vstv %s2231_s26 }
 0x5a2   : > { %v1565_v47 = vmul.f32 %v1564_v45, %v1556_v36  ;;  %v1566_v48 = vmul.f32 %v1564_v45, %v1557_v42  ;;  %v1567_v46 = vmul.f32 %v1564_v45, %v1558_v43  ;;  %v1568_v50 = vmul.f32 %v1564_v45, %v1559_v44 }
 0x5a4   : > { %v1595_v51 = vmul.f32 %v1586_v32, %v1567_v46  ;;  %v1596_v52 = vmul.f32 %v1591_v35, %v1568_v50  ;;  %v1593_v53 = vmul.f32 %v1576_v37, %v1565_v47  ;;  %v1594_v54 = vmul.f32 %v1581_v34, %v1566_v48 }
 0x5a6   : > { %v1621_v49 = vadd.f32 %v1604_v38, %v1593_v53  ;;  %v1622_v61 = vadd.f32 %v1609_v39, %v1594_v54  ;;  %v1623_v40 = vadd.f32 %v1614_v55, %v1595_v51  ;;  %v1624_v63 = vadd.f32 %v1619_v60, %v1596_v52 }
 0x5a8   : > { %v1628_v59 = vpack.c.bf16 %v1622_v61, %v1621_v49  ;;  %v1629_v0 = vpack.c.bf16 %v1624_v63, %v1623_v40 }
 0x5aa   : > { %2203 = vmatprep.subr.bf16.mxu1 %v1628_v59 }
 0x5ab   : > { %2204 = vmatpush3.bf16.msra.mxu1 %v1628_v59 }
 0x5ac   : > { %2205 = vmatprep.subr.bf16.mxu1 %v1629_v0 }
 0x5af   : > { %2206 = vmatpush3.bf16.msra.mxu1 %v1629_v0 }
 0x5b2   : > { %2208 = vmatmul.mubr.msk.bf16.vlgmr.msra.gmra.mrb[0].mxu1 %vm1656_vm14, %v2361_v1 }
 0x685   : > { %v2209_v4 = vpop.f32.mrb[0].mxu1 }
 0x686   : > { %v1706_v5 = vadd.f32 %v2209_v4, %v1646_v3  ;;  %v1697_v6 = vpop.f32.mrb[1].mxu1 }
 0x687   : > { %v1698_v7 = vadd.f32 %v1697_v6, %v1636_v2  ;;  %v2210_v8 = vpop.f32.mrb[2].mxu1  ;;  %1720 = sbr.rel (%p2157_p13) target bundleno = 1911 (0x777), region = 120 }
 0x688   : > { %v1713_v10 = vadd.f32 %v1706_v5, %v2879_v58  ;;  %v1700_v11 = vpop.f32.mrb[3].mxu1  ;;  %v2545_v58 = vmov (!%p2157_p13), 0  }
 0x689   : > { %v1711_v12 = vadd.f32 %v1698_v7, %v2875_v56  ;;  %v1701_v13 = vadd.f32 %v1700_v11, %v1641_v9  ;;  %v1726_v56 = vld [vmem:[%s3234_s7] sm:$0xff] (!%p2157_p13)  ;;  %2366 = vset.pattern.permute.xlu0 (!%p2157_p13), %v2545_v58 }
 0x68a   : > { %1716 = vst [vmem:[#allocation2 + $0x10] sm:$0xff] %v1713_v10  ;;  %1730 = vperm.xlu0 (!%p2157_p13), %2366, %v1726_v56  }
 0x68b   : > { %1714 = vst [vmem:[#allocation2] sm:$0xff] %v1711_v12  ;;  %v1712_v14 = vadd.f32 %v1701_v13, %v2877_v57  ;;  %v2367_v57 = vld [vmem:[%s3235_s10] sm:$0xff] (!%p2157_p13)  }
 0x68d   : > { %1715 = vst [vmem:[#allocation2 + $0x8] sm:$0xff] %v1712_v14 }
 0x68e   : > { %1735 = vperm.xlu0 %2366, %v1727_v18  }
 0x691   : > { %v1796_v19 = vld [vmem:[#allocation2 + $0x10] sm:$0xff] }
 0x692   : > { %v1721_v15 = vld [vmem:[#allocation2] sm:$0xff]  ;;  %1797 = vst [vmem:[%s2848_s22] sm:$0xff] %v1796_v19 }
 0x694   : > { %v1722_v16 = vld [vmem:[#allocation2 + $0x8] sm:$0xff] }
 0x695   : > { %v1725_v62 = vpack.c.bf16 %v1722_v16, %v1721_v15 }
 0x697   : > { %2212 = vmatpush3.bf16.msra.mxu0 %v1725_v62 }
 0x69a   : > { %2214 = vmatmul.mubr.msk.bf16.vlgmr.msra.gmra.mrb[0].mxu0 %vm1743_vm0, %v2367_v57 }
 0x709   : > { %v1731_v20 = vpop.permute.xlu0 %1730 }
 0x70d   : > { %v1736_v24 = vpop.permute.xlu0 %1735 }
 0x76d   : > { %v1781_v21 = vpop.f32.mrb[0].mxu0 }
 0x76e   : > { %v1782_v22 = vadd.f32 %v1781_v21, %v1731_v20  ;;  %v2215_v23 = vpop.f32.mrb[1].mxu0 }
 0x76f   : > { %v1784_v26 = vpop.f32.mrb[2].mxu0 }
 0x770   : > { %v1788_v27 = vmax.f32 %v1782_v22, 0.0  ;;  %v1785_v28 = vadd.f32 %v1784_v26, %v1736_v24  ;;  %v2216_v29 = vpop.f32.mrb[3].mxu0 }
 0x772   : > { %v1792_v31 = vmul.f32 %v1790_v25, %v1788_v27  ;;  %v1789_v33 = vmax.f32 %v1785_v28, 0.0 }
 0x774   : > { %1794 = vst [vmem:[%s2846_s24] sm:$0xff] %v1792_v31  ;;  %v1793_v34 = vmul.f32 %v1791_v30, %v1789_v33 }
 0x776   : > { %1795 = vst [vmem:[%s2846_s24 + $0x8] sm:$0xff] %v1793_v34 }
 0x777 PF: > { %s3237_s1 = sld [smem:[#allocation18_spill]]  ;;  %s3238_s25 = sld [smem:[#allocation27_spill]] }
 0x778   : > { %s3239_s6 = sld [smem:[#allocation23_spill]]  ;;  %s3240_s29 = sld [smem:[#allocation49_spill]] }
 0x779   : > { %s1817_s8 = sshll.u32 %s2846_s24, 4  ;;  %s2546_s2 = smov [#allocation8]   ;;  %s3040_s8 = int_to_ptr.vmem [resolvable:$true] %s1817_s8 }
 0x77a   : > { %s2398_s19 = scalar_lea.vmem %s3040_s8, 256  ;;  %s2402_s4 = sshll.u32 %s2546_s2, 4  ;;  %s2403_s4 = int_to_ptr.vmem [resolvable:$false] %s2402_s4 }
 0x77b   : > { %p2399_p0 = scmp.ne.s32.totalorder %s3040_s8, %s2398_s19  ;;  %s2404_s0 = scalar_lea.vmem %s2403_s4, 512 }
 0x77c   : > { %p2405_p11 = scmp.lt.s32.totalorder %s3040_s8, %s2403_s4  ;;  %p2406_p12 = scmp.lt.s32.totalorder %s2404_s0, %s2398_s19 }
 0x77d   : > { %s2176_s9 = sshll.u32 %s3237_s1, 8  ;;  %s1799_s23 = scalar_lea.sflag [#allocation4], %s3238_s25 }
 0x77e   : > { %s3241_s14 = smov %s3240_s29  ;;  %s3037_s3 = scalar_lea.hbm %s3240_s29, %s2176_s9 }
 0x77f   : > { %p3242_p2 = scmp.ne.s32.totalorder %s3239_s6, 0  ;;  %p2407_p1 = por %p2406_p12, %p2405_p11 }
 0x781   : > { %p2400_p7 = pnand %p2399_p0, %p3242_p2 }
 0x783   : > { %p2401_p8 = pneg %p2400_p7 }
 0x785   : > { %p2408_p4 = pnand %p2407_p1, %p2401_p8 }
 0x787   : > { %2411 = shalt.err (!%p2408_p4)
}
 0x788   : > { %s2412_s24 = scalar_lea.hbm %s3037_s3, 256  ;;  %s2416_s28 = scalar_lea.hbm %s3241_s14, 512 }
 0x789   : > { %p2413_p5 = scmp.ne.s32.totalorder %s3037_s3, %s2412_s24  ;;  %p2417_p9 = scmp.lt.u32.totalorder %s3037_s3, %s3241_s14 }
 0x78a   : > { %p2418_p10 = scmp.lt.u32.totalorder %s2416_s28, %s2412_s24  ;;  %p2420_p0 = scmp.lt.u32.totalorder %s2412_s24, %s3037_s3 }
 0x78b   : > { %p2414_p6 = pnand %p2413_p5, %p3242_p2 }
 0x78c   : > { %p2419_p13 = por %p2418_p10, %p2417_p9 }
 0x78d   : > { %p2415_p3 = pneg %p2414_p6 }
 0x78e   : > { %p2421_p7 = por %p2420_p0, %p2419_p13 }
 0x790   : > { %p2422_p8 = pnand %p2421_p7, %p2415_p3 }
 0x792   : > { %2425 = shalt.err (!%p2422_p8)
}
 0x793   : > { %s2547_s10 = smov 128   ;;  %s2548_s13 = smov 8  }
 0x794   : > { %2240 = dma.vmem_to_hbm [thread:$0]  (%p3242_p2), %s3040_s8, 256, %s3037_s3, %s1799_s23, %s2547_s10, %s2547_s10, %s2548_s13  }
 0x795   : > { %s2164_s30 = sshll.u32 %s3237_s1, 7  ;;  %s1833_s21 = sshll.u32 %s2848_s22, 4  ;;  %s1834_s21 = int_to_ptr.vmem [resolvable:$true] %s1833_s21 }
 0x796   : > { %s3243_s5 = sld [smem:[#allocation50_spill]]  ;;  %s1804_s19 = scalar_lea.sflag [#allocation10], %s3238_s25 }
 0x797   : > { %s2426_s2 = scalar_lea.vmem %s1834_s21, 128  ;;  %s2549_s4 = smov [#allocation9]  }
 0x798   : > { %p2427_p11 = scmp.ne.s32.totalorder %s1834_s21, %s2426_s2  ;;  %s2430_s0 = sshll.u32 %s2549_s4, 4  ;;  %s2431_s0 = int_to_ptr.vmem [resolvable:$false] %s2430_s0 }
 0x799   : > { %s2432_s24 = scalar_lea.vmem %s2431_s0, 256  ;;  %p2433_p4 = scmp.lt.s32.totalorder %s1834_s21, %s2431_s0 }
 0x79a   : > { %p2428_p12 = pnand %p2427_p11, %p3242_p2  ;;  %p2434_p5 = scmp.lt.s32.totalorder %s2432_s24, %s2426_s2 }
 0x79c   : > { %s3071_s29 = scalar_lea.hbm %s3243_s5, %s2164_s30  ;;  %p2429_p1 = pneg %p2428_p12 }
 0x79d   : > { %p2435_p6 = por %p2434_p5, %p2433_p4 }
 0x79f   : > { %p2436_p3 = pnand %p2435_p6, %p2429_p1 }
 0x7a1   : > { %2439 = shalt.err (!%p2436_p3)
}
 0x7a2   : > { %s2440_s22 = scalar_lea.hbm %s3071_s29, 128  ;;  %s2444_s3 = scalar_lea.hbm %s3243_s5, 256 }
 0x7a3   : > { %p2441_p9 = scmp.ne.s32.totalorder %s3071_s29, %s2440_s22  ;;  %p2445_p0 = scmp.lt.u32.totalorder %s3071_s29, %s3243_s5 }
 0x7a4   : > { %p2446_p7 = scmp.lt.u32.totalorder %s2444_s3, %s2440_s22  ;;  %p2448_p11 = scmp.lt.u32.totalorder %s2440_s22, %s3071_s29 }
 0x7a5   : > { %p2442_p10 = pnand %p2441_p9, %p3242_p2 }
 0x7a6   : > { %p2447_p8 = por %p2446_p7, %p2445_p0 }
 0x7a7   : > { %p2443_p13 = pneg %p2442_p10 }
 0x7a8   : > { %p2449_p12 = por %p2448_p11, %p2447_p8 }
 0x7aa   : > { %p2450_p1 = pnand %p2449_p12, %p2443_p13 }
 0x7ac   : > { %2453 = shalt.err (!%p2450_p1)
}
 0x7ad   : > { %2241 = dma.vmem_to_hbm [thread:$0]  (%p3242_p2), %s1834_s21, 128, %s3071_s29, %s1804_s19  }
 0x7ae PF: > { %s3244_s26 = sld [smem:[#allocation21_spill]]  ;;  %s3245_s12 = sld [smem:[#allocation15_spill]] }
 0x7af   : > { %s3246_s28 = sld [smem:[#allocation25_spill]] }
 0x7b4   : > { %p2262_p4 = scmp.ge.s32.totalorder %s3244_s26, 2  ;;  %s1845_s17 = sand.u32 1, %s3245_s12  }
 0x7b5   : > { %p3247_p5 = scmp.ne.s32.totalorder %s3246_s28, 0  ;;  %s1846_s20 = scalar_lea.sflag [#allocation4], %s1845_s17 }
 0x7b7   : > { %p2252_p6 = pnand %p2262_p4, %p3247_p5 }
 0x7b9   : > { %2495 = dma.done.wait (!%p2252_p6), %s1846_s20, 256  }
 0x7ba   : > { %2497 = vsyncadd (!%p2252_p6), %s1846_s20, 4294967040  ;;  %s1855_s10 = scalar_lea.sflag [#allocation10], %s1845_s17 }
 0x7bb   : > { %2499 = dma.done.wait (!%p2252_p6), %s1855_s10, 128  }
 0x7bc   : > { %2501 = vsyncadd (!%p2252_p6), %s1855_s10, 4294967168  ;;  %s41_s1 = sadd.s32 1, %s3244_s26   ;;  %s3248_s3 = sld [smem:[#allocation16_spill]] }
 0x7bd   : > { %p38_p3 = scmp.ge.s32.totalorder %s41_s1, 10   ;;  %s3249_s28 = sld [smem:[#allocation17_spill]] }
 0x7be   : > { %s3250_s29 = sld [smem:[#allocation26_spill]]  ;;  %s3251_s30 = sld [smem:[#allocation19_spill]] }
 0x7bf   : > { %s3252_s4 = sld [smem:[#allocation20_spill]]  ;;  %s3253_s0 = sld [smem:[#allocation22_spill]] }
 0x7c0   : > { %s3254_s23 = sld [smem:[#allocation24_spill]]  ;;  %40 = sbr.rel (!%p38_p3) target bundleno = 32 (0x20), region = 209 }
 0x7c7   :  { %1860 = vsyncpa [#allocation4], 1 }
 0x7c8   :  { %1862 = vsyncpa [#allocation4 + $0x1], 1 }
 0x7c9   :  { %1863 = vsyncpa [#allocation10], 1 }
 0x7ca   :  { %1865 = vsyncpa [#allocation10 + $0x1], 1 }
 0x7cb   :  { %1866 = vsyncpa [#allocation5], 1 }
 0x7cc   :  { %1868 = vsyncpa [#allocation5 + $0x1], 1 }
 0x7cd   :  { %1869 = vsyncpa [#allocation7], 1 }

</bundles_post_ra>
